<compile_context>
chip_gen: v7x
topology: tpu7x:2x2x1
jax: 0.10.0
libtpu: 0.0.40
codegen_flags: <defaults>
</compile_context>

<pallas_src>
import math
import numpy as np
import jax
import jax.numpy as jnp
from jax import lax
from jax.experimental import pallas as pl
from jax.experimental.pallas import tpu as pltpu


# ----------------------------------------------------------------------------
# Pallas kernel (fused GRU stack + FC head)
# ----------------------------------------------------------------------------
def _full_spec(shape):
    # Single block = whole array (block shape equals full array dims).
    ndim = len(shape)
    return pl.BlockSpec(shape, lambda i, _n=ndim: (0,) * _n)


def _make_fused_kernel(num_layers, T, B, H):
    """Build the fused kernel.

    Ref layout (in order):
      x_ref:                (T*B, D_in)       flattened time-major features
      per layer l (4 refs): wih (D_in, 3H), whh (H, 3H),
                            b_all (1, 3H) = b_ih + [b_hr, b_hz, 0],
                            b_hn  (1, H)  = b_hn
      fc_w_ref:             (H, C)
      fc_b_ref:             (1, C)
      out_ref:              (T*B, C)
    """

    def kernel(*refs):
        x_ref = refs[0]
        layer_refs = refs[1:1 + 4 * num_layers]
        fc_w_ref = refs[1 + 4 * num_layers]
        fc_b_ref = refs[2 + 4 * num_layers]
        out_ref = refs[3 + 4 * num_layers]

        cur = x_ref[...]  # (T*B, D_in) — stays resident on-chip across layers

        for l in range(num_layers):
            wih = layer_refs[4 * l][...]        # (D_in, 3H), gates [r|z|n]
            whh = layer_refs[4 * l + 1][...]    # (H, 3H)
            b_all = layer_refs[4 * l + 2][...]  # (1, 3H)
            b_hn = layer_refs[4 * l + 3][...]   # (1, H)

            # Hoisted input projection: one large MXU matmul for all T steps,
            # with all hoistable biases pre-folded in.
            gi = jnp.dot(cur, wih, preferred_element_type=jnp.float32) + b_all  # (T*B, 3H)

            h = jnp.zeros((B, H), jnp.float32)
            outs = []
            for t in range(T):  # static unroll: T known, gives LLO full visibility
                # Single fused hidden->gates matmul per step (serial critical path).
                gh = jnp.dot(h, whh, preferred_element_type=jnp.float32)  # (B, 3H)
                gi_t = gi[t * B:(t + 1) * B]                              # static slice (B, 3H)

                r = jax.nn.sigmoid(gi_t[:, :H] + gh[:, :H])
                z = jax.nn.sigmoid(gi_t[:, H:2 * H] + gh[:, H:2 * H])
                n = jnp.tanh(gi_t[:, 2 * H:] + r * (gh[:, 2 * H:] + b_hn))
                h = (1.0 - z) * n + z * h
                outs.append(h)

            cur = jnp.concatenate(outs, axis=0)  # (T*B, H) — next layer's input

        # FC head fused into the same kernel: no extra pallas_call / HBM bounce.
        out_ref[...] = (
            jnp.dot(cur, fc_w_ref[...], preferred_element_type=jnp.float32)
            + fc_b_ref[...]
        )

    return kernel


# ----------------------------------------------------------------------------
# Parameter init (PyTorch-style uniform(-1/sqrt(H), 1/sqrt(H)), gate order r,z,n)
# ----------------------------------------------------------------------------
def init_params(key, input_size, hidden_size, num_layers, num_classes):
    H = hidden_size
    k = 1.0 / math.sqrt(H)
    layers, raw_layers = [], []
    for layer in range(num_layers):
        d_in = input_size if layer == 0 else H
        key, k1, k2, k3, k4 = jax.random.split(key, 5)
        # PyTorch layout: weight_ih_l (3H, d_in), weight_hh_l (3H, H), biases (3H,)
        w_ih = jax.random.uniform(k1, (3 * H, d_in), jnp.float32, -k, k)
        w_hh = jax.random.uniform(k2, (3 * H, H), jnp.float32, -k, k)
        b_ih = jax.random.uniform(k3, (3 * H,), jnp.float32, -k, k)
        b_hh = jax.random.uniform(k4, (3 * H,), jnp.float32, -k, k)
        raw_layers.append({"w_ih": w_ih, "w_hh": w_hh, "b_ih": b_ih, "b_hh": b_hh})

        # Kernel layout: concatenated gate-major weights + folded biases.
        b_all = b_ih + jnp.concatenate([b_hh[: 2 * H], jnp.zeros((H,), jnp.float32)])
        layers.append(
            {
                "wih": w_ih.T,                   # (d_in, 3H)
                "whh": w_hh.T,                   # (H, 3H)
                "b_all": b_all[None, :],         # (1, 3H)
                "b_hn": b_hh[2 * H:][None, :],   # (1, H)
            }
        )

    key, k5, k6 = jax.random.split(key, 3)
    fc_w = jax.random.uniform(k5, (num_classes, H), jnp.float32, -k, k)
    fc_b = jax.random.uniform(k6, (num_classes,), jnp.float32, -k, k)
    return {
        "layers": layers,
        "raw": raw_layers,
        "fc_w": fc_w.T,                 # (H, C)
        "fc_b": fc_b[None, :],          # (1, C)
        "fc_w_raw": fc_w,
        "fc_b_raw": fc_b,
        "hidden_size": H,
        "num_classes": num_classes,
    }


# ----------------------------------------------------------------------------
# Forward pass (single fused pallas_call)
# ----------------------------------------------------------------------------
def sequence_predictor_forward(x, params):
    # _prepare_features_: (B, 1, H, W) -> (W=T, B, H=D)
    feats = jnp.transpose(x[:, 0, :, :], (2, 0, 1)).astype(jnp.float32)
    T, B, D = feats.shape
    H = params["hidden_size"]
    C = params["num_classes"]
    num_layers = len(params["layers"])

    # TODO(synk): nn.GRU inter-layer dropout applies only in training mode; this
    # kernel implements eval-mode (deterministic) semantics.
    # TODO(synk): bidirectional=True variant not implemented (module default False).

    x_flat = feats.reshape(T * B, D)
    inputs = [x_flat]
    in_specs = [_full_spec(x_flat.shape)]
    for layer in params["layers"]:
        for name in ("wih", "whh", "b_all", "b_hn"):
            arr = layer[name]
            inputs.append(arr)
            in_specs.append(_full_spec(arr.shape))
    inputs.extend([params["fc_w"], params["fc_b"]])
    in_specs.extend([_full_spec(params["fc_w"].shape), _full_spec(params["fc_b"].shape)])

    kernel = _make_fused_kernel(num_layers, T, B, H)
    out_flat = pl.pallas_call(
        kernel,
        grid=(1,),
        in_specs=in_specs,
        out_specs=_full_spec((T * B, C)),
        out_shape=jax.ShapeDtypeStruct((T * B, C), jnp.float32),
        compiler_params=pltpu.CompilerParams(dimension_semantics=("arbitrary",)),
    )(*inputs)
    return out_flat.reshape(T, B, C)  # (W, B, num_classes)


# ----------------------------------------------------------------------------
# Pure-JAX reference (raw PyTorch weight layout — validates the bias folding)
# ----------------------------------------------------------------------------
def _gru_layer_ref(x, w_ih, w_hh, b_ih, b_hh):
    T, B, _ = x.shape
    H = w_hh.shape[1]

    def step(h, x_t):
        gi = x_t @ w_ih.T + b_ih
        gh = h @ w_hh.T + b_hh
        i_r, i_z, i_n = gi[:, :H], gi[:, H:2 * H], gi[:, 2 * H:]
        h_r, h_z, h_n = gh[:, :H], gh[:, H:2 * H], gh[:, 2 * H:]
        r = jax.nn.sigmoid(i_r + h_r)
        z = jax.nn.sigmoid(i_z + h_z)
        n = jnp.tanh(i_n + r * h_n)
        h_new = (1.0 - z) * n + z * h
        return h_new, h_new

    _, ys = lax.scan(step, jnp.zeros((B, H), jnp.float32), x)
    return ys


def sequence_predictor_ref(x, params):
    feats = jnp.transpose(x[:, 0, :, :], (2, 0, 1)).astype(jnp.float32)
    h = feats
    for raw in params["raw"]:
        h = _gru_layer_ref(h, raw["w_ih"], raw["w_hh"], raw["b_ih"], raw["b_hh"])
    return h @ params["fc_w_raw"].T + params["fc_b_raw"]


# ----------------------------------------------------------------------------
if __name__ == "__main__":
    B, Hfeat, W = 2, 16, 8  # batch, image-height (=input_size), width (=seq len)
    input_size, hidden_size, num_layers, num_classes = Hfeat, 32, 2, 10

    key = jax.random.PRNGKey(0)
    key, kx = jax.random.split(key)
    x = jax.random.normal(kx, (B, 1, Hfeat, W), dtype=jnp.float32)

    params = init_params(key, input_size, hidden_size, num_layers, num_classes)

    out = sequence_predictor_forward(x, params)
    out = jax.block_until_ready(out)

    ref = sequence_predictor_ref(x, params)
    np.testing.assert_allclose(np.asarray(out), np.asarray(ref), rtol=1e-5, atol=1e-5)
    assert out.shape == (W, B, num_classes)

    print("KERNEL_OK")
</pallas_src>

<mosaic_0001>
module attributes {stable_mosaic.version = 11 : i64} {
  func.func @kernel(%arg0: i32, %arg1: memref<16x16xf32, #tpu.memory_space<vmem>>, %arg2: memref<16x96xf32, #tpu.memory_space<vmem>>, %arg3: memref<32x96xf32, #tpu.memory_space<vmem>>, %arg4: memref<1x96xf32, #tpu.memory_space<vmem>>, %arg5: memref<1x32xf32, #tpu.memory_space<vmem>>, %arg6: memref<32x96xf32, #tpu.memory_space<vmem>>, %arg7: memref<32x96xf32, #tpu.memory_space<vmem>>, %arg8: memref<1x96xf32, #tpu.memory_space<vmem>>, %arg9: memref<1x32xf32, #tpu.memory_space<vmem>>, %arg10: memref<32x10xf32, #tpu.memory_space<vmem>>, %arg11: memref<1x10xf32, #tpu.memory_space<vmem>>, %arg12: memref<16x10xf32, #tpu.memory_space<vmem>>) attributes {dimension_semantics = [#tpu.dimension_semantics<arbitrary>], iteration_bounds = array<i64: 1>, scalar_prefetch = 0 : i64, scratch_operands = 0 : i64, tpu.core_type = #tpu.core_type<tc>, window_params = [{pipeline_mode = #tpu.pipeline_mode<synchronous>, transform_indices = @transform_0, window_bounds = array<i64: 16, 16>}, {pipeline_mode = #tpu.pipeline_mode<synchronous>, transform_indices = @transform_1, window_bounds = array<i64: 16, 96>}, {pipeline_mode = #tpu.pipeline_mode<synchronous>, transform_indices = @transform_2, window_bounds = array<i64: 32, 96>}, {pipeline_mode = #tpu.pipeline_mode<synchronous>, transform_indices = @transform_3, window_bounds = array<i64: 1, 96>}, {pipeline_mode = #tpu.pipeline_mode<synchronous>, transform_indices = @transform_4, window_bounds = array<i64: 1, 32>}, {pipeline_mode = #tpu.pipeline_mode<synchronous>, transform_indices = @transform_5, window_bounds = array<i64: 32, 96>}, {pipeline_mode = #tpu.pipeline_mode<synchronous>, transform_indices = @transform_6, window_bounds = array<i64: 32, 96>}, {pipeline_mode = #tpu.pipeline_mode<synchronous>, transform_indices = @transform_7, window_bounds = array<i64: 1, 96>}, {pipeline_mode = #tpu.pipeline_mode<synchronous>, transform_indices = @transform_8, window_bounds = array<i64: 1, 32>}, {pipeline_mode = #tpu.pipeline_mode<synchronous>, transform_indices = @transform_9, window_bounds = array<i64: 32, 10>}, {pipeline_mode = #tpu.pipeline_mode<synchronous>, transform_indices = @transform_10, window_bounds = array<i64: 1, 10>}, {pipeline_mode = #tpu.pipeline_mode<synchronous>, transform_indices = @transform_11, window_bounds = array<i64: 16, 10>}]} {
    %c0 = arith.constant 0 : index
    %c0_0 = arith.constant 0 : index
    %0 = vector.load %arg1[%c0, %c0_0] : memref<16x16xf32, #tpu.memory_space<vmem>>, vector<16x16xf32>
    %c0_1 = arith.constant 0 : index
    %c0_2 = arith.constant 0 : index
    %1 = vector.load %arg2[%c0_1, %c0_2] : memref<16x96xf32, #tpu.memory_space<vmem>>, vector<16x96xf32>
    %c0_3 = arith.constant 0 : index
    %c0_4 = arith.constant 0 : index
    %2 = vector.load %arg3[%c0_3, %c0_4] : memref<32x96xf32, #tpu.memory_space<vmem>>, vector<32x96xf32>
    %c0_5 = arith.constant 0 : index
    %c0_6 = arith.constant 0 : index
    %3 = vector.load %arg4[%c0_5, %c0_6] : memref<1x96xf32, #tpu.memory_space<vmem>>, vector<1x96xf32>
    %c0_7 = arith.constant 0 : index
    %c0_8 = arith.constant 0 : index
    %4 = vector.load %arg5[%c0_7, %c0_8] : memref<1x32xf32, #tpu.memory_space<vmem>>, vector<1x32xf32>
    %cst = arith.constant dense<0.000000e+00> : vector<16x96xf32>
    %5 = tpu.matmul %0, %1, %cst {dimension_numbers = #tpu.dot_dimension_numbers<[1], [0], [0], [1], [0, 0, 1, 1], [], []>} : vector<16x16xf32>, vector<16x96xf32>, vector<16x96xf32> -> vector<16x96xf32>
    %6 = vector.broadcast %3 : vector<1x96xf32> to vector<16x96xf32>
    %7 = arith.addf %5, %6 : vector<16x96xf32>
    %cst_9 = arith.constant 0.000000e+00 : f32
    %8 = vector.broadcast %cst_9 : f32 to vector<2x32xf32>
    %cst_10 = arith.constant dense<0.000000e+00> : vector<2x96xf32>
    %9 = tpu.matmul %8, %2, %cst_10 {dimension_numbers = #tpu.dot_dimension_numbers<[1], [0], [0], [1], [0, 0, 1, 1], [], []>} : vector<2x32xf32>, vector<32x96xf32>, vector<2x96xf32> -> vector<2x96xf32>
    %10 = vector.extract_strided_slice %7 {offsets = [0, 0], sizes = [2, 96], strides = [1, 1]} : vector<16x96xf32> to vector<2x96xf32>
    %11 = vector.extract_strided_slice %10 {offsets = [0, 0], sizes = [2, 32], strides = [1, 1]} : vector<2x96xf32> to vector<2x32xf32>
    %12 = vector.extract_strided_slice %9 {offsets = [0, 0], sizes = [2, 32], strides = [1, 1]} : vector<2x96xf32> to vector<2x32xf32>
    %13 = arith.addf %11, %12 : vector<2x32xf32>
    %14 = arith.negf %13 : vector<2x32xf32>
    %15 = math.exp %14 : vector<2x32xf32>
    %cst_11 = arith.constant 1.000000e+00 : f32
    %16 = vector.broadcast %cst_11 : f32 to vector<2x32xf32>
    %17 = arith.addf %16, %15 : vector<2x32xf32>
    %18 = arith.divf %16, %17 : vector<2x32xf32>
    %19 = vector.extract_strided_slice %10 {offsets = [0, 32], sizes = [2, 32], strides = [1, 1]} : vector<2x96xf32> to vector<2x32xf32>
    %20 = vector.extract_strided_slice %9 {offsets = [0, 32], sizes = [2, 32], strides = [1, 1]} : vector<2x96xf32> to vector<2x32xf32>
    %21 = arith.addf %19, %20 : vector<2x32xf32>
    %22 = arith.negf %21 : vector<2x32xf32>
    %23 = math.exp %22 : vector<2x32xf32>
    %cst_12 = arith.constant 1.000000e+00 : f32
    %24 = vector.broadcast %cst_12 : f32 to vector<2x32xf32>
    %25 = arith.addf %24, %23 : vector<2x32xf32>
    %26 = arith.divf %24, %25 : vector<2x32xf32>
    %27 = vector.extract_strided_slice %10 {offsets = [0, 64], sizes = [2, 32], strides = [1, 1]} : vector<2x96xf32> to vector<2x32xf32>
    %28 = vector.extract_strided_slice %9 {offsets = [0, 64], sizes = [2, 32], strides = [1, 1]} : vector<2x96xf32> to vector<2x32xf32>
    %29 = vector.broadcast %4 : vector<1x32xf32> to vector<2x32xf32>
    %30 = arith.addf %28, %29 : vector<2x32xf32>
    %31 = arith.mulf %18, %30 : vector<2x32xf32>
    %32 = arith.addf %27, %31 : vector<2x32xf32>
    %33 = math.tanh %32 : vector<2x32xf32>
    %cst_13 = arith.constant 1.000000e+00 : f32
    %34 = vector.broadcast %cst_13 : f32 to vector<2x32xf32>
    %35 = arith.subf %34, %26 : vector<2x32xf32>
    %36 = arith.mulf %35, %33 : vector<2x32xf32>
    %37 = arith.mulf %26, %8 : vector<2x32xf32>
    %38 = arith.addf %36, %37 : vector<2x32xf32>
    %cst_14 = arith.constant dense<0.000000e+00> : vector<2x96xf32>
    %39 = tpu.matmul %38, %2, %cst_14 {dimension_numbers = #tpu.dot_dimension_numbers<[1], [0], [0], [1], [0, 0, 1, 1], [], []>} : vector<2x32xf32>, vector<32x96xf32>, vector<2x96xf32> -> vector<2x96xf32>
    %40 = vector.extract_strided_slice %7 {offsets = [2, 0], sizes = [2, 96], strides = [1, 1]} : vector<16x96xf32> to vector<2x96xf32>
    %41 = vector.extract_strided_slice %40 {offsets = [0, 0], sizes = [2, 32], strides = [1, 1]} : vector<2x96xf32> to vector<2x32xf32>
    %42 = vector.extract_strided_slice %39 {offsets = [0, 0], sizes = [2, 32], strides = [1, 1]} : vector<2x96xf32> to vector<2x32xf32>
    %43 = arith.addf %41, %42 : vector<2x32xf32>
    %44 = arith.negf %43 : vector<2x32xf32>
    %45 = math.exp %44 : vector<2x32xf32>
    %cst_15 = arith.constant 1.000000e+00 : f32
    %46 = vector.broadcast %cst_15 : f32 to vector<2x32xf32>
    %47 = arith.addf %46, %45 : vector<2x32xf32>
    %48 = arith.divf %46, %47 : vector<2x32xf32>
    %49 = vector.extract_strided_slice %40 {offsets = [0, 32], sizes = [2, 32], strides = [1, 1]} : vector<2x96xf32> to vector<2x32xf32>
    %50 = vector.extract_strided_slice %39 {offsets = [0, 32], sizes = [2, 32], strides = [1, 1]} : vector<2x96xf32> to vector<2x32xf32>
    %51 = arith.addf %49, %50 : vector<2x32xf32>
    %52 = arith.negf %51 : vector<2x32xf32>
    %53 = math.exp %52 : vector<2x32xf32>
    %cst_16 = arith.constant 1.000000e+00 : f32
    %54 = vector.broadcast %cst_16 : f32 to vector<2x32xf32>
    %55 = arith.addf %54, %53 : vector<2x32xf32>
    %56 = arith.divf %54, %55 : vector<2x32xf32>
    %57 = vector.extract_strided_slice %40 {offsets = [0, 64], sizes = [2, 32], strides = [1, 1]} : vector<2x96xf32> to vector<2x32xf32>
    %58 = vector.extract_strided_slice %39 {offsets = [0, 64], sizes = [2, 32], strides = [1, 1]} : vector<2x96xf32> to vector<2x32xf32>
    %59 = vector.broadcast %4 : vector<1x32xf32> to vector<2x32xf32>
    %60 = arith.addf %58, %59 : vector<2x32xf32>
    %61 = arith.mulf %48, %60 : vector<2x32xf32>
    %62 = arith.addf %57, %61 : vector<2x32xf32>
    %63 = math.tanh %62 : vector<2x32xf32>
    %cst_17 = arith.constant 1.000000e+00 : f32
    %64 = vector.broadcast %cst_17 : f32 to vector<2x32xf32>
    %65 = arith.subf %64, %56 : vector<2x32xf32>
    %66 = arith.mulf %65, %63 : vector<2x32xf32>
    %67 = arith.mulf %56, %38 : vector<2x32xf32>
    %68 = arith.addf %66, %67 : vector<2x32xf32>
    %cst_18 = arith.constant dense<0.000000e+00> : vector<2x96xf32>
    %69 = tpu.matmul %68, %2, %cst_18 {dimension_numbers = #tpu.dot_dimension_numbers<[1], [0], [0], [1], [0, 0, 1, 1], [], []>} : vector<2x32xf32>, vector<32x96xf32>, vector<2x96xf32> -> vector<2x96xf32>
    %70 = vector.extract_strided_slice %7 {offsets = [4, 0], sizes = [2, 96], strides = [1, 1]} : vector<16x96xf32> to vector<2x96xf32>
    %71 = vector.extract_strided_slice %70 {offsets = [0, 0], sizes = [2, 32], strides = [1, 1]} : vector<2x96xf32> to vector<2x32xf32>
    %72 = vector.extract_strided_slice %69 {offsets = [0, 0], sizes = [2, 32], strides = [1, 1]} : vector<2x96xf32> to vector<2x32xf32>
    %73 = arith.addf %71, %72 : vector<2x32xf32>
    %74 = arith.negf %73 : vector<2x32xf32>
    %75 = math.exp %74 : vector<2x32xf32>
    %cst_19 = arith.constant 1.000000e+00 : f32
    %76 = vector.broadcast %cst_19 : f32 to vector<2x32xf32>
    %77 = arith.addf %76, %75 : vector<2x32xf32>
    %78 = arith.divf %76, %77 : vector<2x32xf32>
    %79 = vector.extract_strided_slice %70 {offsets = [0, 32], sizes = [2, 32], strides = [1, 1]} : vector<2x96xf32> to vector<2x32xf32>
    %80 = vector.extract_strided_slice %69 {offsets = [0, 32], sizes = [2, 32], strides = [1, 1]} : vector<2x96xf32> to vector<2x32xf32>
    %81 = arith.addf %79, %80 : vector<2x32xf32>
    %82 = arith.negf %81 : vector<2x32xf32>
    %83 = math.exp %82 : vector<2x32xf32>
    %cst_20 = arith.constant 1.000000e+00 : f32
    %84 = vector.broadcast %cst_20 : f32 to vector<2x32xf32>
    %85 = arith.addf %84, %83 : vector<2x32xf32>
    %86 = arith.divf %84, %85 : vector<2x32xf32>
    %87 = vector.extract_strided_slice %70 {offsets = [0, 64], sizes = [2, 32], strides = [1, 1]} : vector<2x96xf32> to vector<2x32xf32>
    %88 = vector.extract_strided_slice %69 {offsets = [0, 64], sizes = [2, 32], strides = [1, 1]} : vector<2x96xf32> to vector<2x32xf32>
    %89 = vector.broadcast %4 : vector<1x32xf32> to vector<2x32xf32>
    %90 = arith.addf %88, %89 : vector<2x32xf32>
    %91 = arith.mulf %78, %90 : vector<2x32xf32>
    %92 = arith.addf %87, %91 : vector<2x32xf32>
    %93 = math.tanh %92 : vector<2x32xf32>
    %cst_21 = arith.constant 1.000000e+00 : f32
    %94 = vector.broadcast %cst_21 : f32 to vector<2x32xf32>
    %95 = arith.subf %94, %86 : vector<2x32xf32>
    %96 = arith.mulf %95, %93 : vector<2x32xf32>
    %97 = arith.mulf %86, %68 : vector<2x32xf32>
    %98 = arith.addf %96, %97 : vector<2x32xf32>
    %cst_22 = arith.constant dense<0.000000e+00> : vector<2x96xf32>
    %99 = tpu.matmul %98, %2, %cst_22 {dimension_numbers = #tpu.dot_dimension_numbers<[1], [0], [0], [1], [0, 0, 1, 1], [], []>} : vector<2x32xf32>, vector<32x96xf32>, vector<2x96xf32> -> vector<2x96xf32>
    %100 = vector.extract_strided_slice %7 {offsets = [6, 0], sizes = [2, 96], strides = [1, 1]} : vector<16x96xf32> to vector<2x96xf32>
    %101 = vector.extract_strided_slice %100 {offsets = [0, 0], sizes = [2, 32], strides = [1, 1]} : vector<2x96xf32> to vector<2x32xf32>
    %102 = vector.extract_strided_slice %99 {offsets = [0, 0], sizes = [2, 32], strides = [1, 1]} : vector<2x96xf32> to vector<2x32xf32>
    %103 = arith.addf %101, %102 : vector<2x32xf32>
    %104 = arith.negf %103 : vector<2x32xf32>
    %105 = math.exp %104 : vector<2x32xf32>
    %cst_23 = arith.constant 1.000000e+00 : f32
    %106 = vector.broadcast %cst_23 : f32 to vector<2x32xf32>
    %107 = arith.addf %106, %105 : vector<2x32xf32>
    %108 = arith.divf %106, %107 : vector<2x32xf32>
    %109 = vector.extract_strided_slice %100 {offsets = [0, 32], sizes = [2, 32], strides = [1, 1]} : vector<2x96xf32> to vector<2x32xf32>
    %110 = vector.extract_strided_slice %99 {offsets = [0, 32], sizes = [2, 32], strides = [1, 1]} : vector<2x96xf32> to vector<2x32xf32>
    %111 = arith.addf %109, %110 : vector<2x32xf32>
    %112 = arith.negf %111 : vector<2x32xf32>
    %113 = math.exp %112 : vector<2x32xf32>
    %cst_24 = arith.constant 1.000000e+00 : f32
    %114 = vector.broadcast %cst_24 : f32 to vector<2x32xf32>
    %115 = arith.addf %114, %113 : vector<2x32xf32>
    %116 = arith.divf %114, %115 : vector<2x32xf32>
    %117 = vector.extract_strided_slice %100 {offsets = [0, 64], sizes = [2, 32], strides = [1, 1]} : vector<2x96xf32> to vector<2x32xf32>
    %118 = vector.extract_strided_slice %99 {offsets = [0, 64], sizes = [2, 32], strides = [1, 1]} : vector<2x96xf32> to vector<2x32xf32>
    %119 = vector.broadcast %4 : vector<1x32xf32> to vector<2x32xf32>
    %120 = arith.addf %118, %119 : vector<2x32xf32>
    %121 = arith.mulf %108, %120 : vector<2x32xf32>
    %122 = arith.addf %117, %121 : vector<2x32xf32>
    %123 = math.tanh %122 : vector<2x32xf32>
    %cst_25 = arith.constant 1.000000e+00 : f32
    %124 = vector.broadcast %cst_25 : f32 to vector<2x32xf32>
    %125 = arith.subf %124, %116 : vector<2x32xf32>
    %126 = arith.mulf %125, %123 : vector<2x32xf32>
    %127 = arith.mulf %116, %98 : vector<2x32xf32>
    %128 = arith.addf %126, %127 : vector<2x32xf32>
    %cst_26 = arith.constant dense<0.000000e+00> : vector<2x96xf32>
    %129 = tpu.matmul %128, %2, %cst_26 {dimension_numbers = #tpu.dot_dimension_numbers<[1], [0], [0], [1], [0, 0, 1, 1], [], []>} : vector<2x32xf32>, vector<32x96xf32>, vector<2x96xf32> -> vector<2x96xf32>
    %130 = vector.extract_strided_slice %7 {offsets = [8, 0], sizes = [2, 96], strides = [1, 1]} : vector<16x96xf32> to vector<2x96xf32>
    %131 = vector.extract_strided_slice %130 {offsets = [0, 0], sizes = [2, 32], strides = [1, 1]} : vector<2x96xf32> to vector<2x32xf32>
    %132 = vector.extract_strided_slice %129 {offsets = [0, 0], sizes = [2, 32], strides = [1, 1]} : vector<2x96xf32> to vector<2x32xf32>
    %133 = arith.addf %131, %132 : vector<2x32xf32>
    %134 = arith.negf %133 : vector<2x32xf32>
    %135 = math.exp %134 : vector<2x32xf32>
    %cst_27 = arith.constant 1.000000e+00 : f32
    %136 = vector.broadcast %cst_27 : f32 to vector<2x32xf32>
    %137 = arith.addf %136, %135 : vector<2x32xf32>
    %138 = arith.divf %136, %137 : vector<2x32xf32>
    %139 = vector.extract_strided_slice %130 {offsets = [0, 32], sizes = [2, 32], strides = [1, 1]} : vector<2x96xf32> to vector<2x32xf32>
    %140 = vector.extract_strided_slice %129 {offsets = [0, 32], sizes = [2, 32], strides = [1, 1]} : vector<2x96xf32> to vector<2x32xf32>
    %141 = arith.addf %139, %140 : vector<2x32xf32>
    %142 = arith.negf %141 : vector<2x32xf32>
    %143 = math.exp %142 : vector<2x32xf32>
    %cst_28 = arith.constant 1.000000e+00 : f32
    %144 = vector.broadcast %cst_28 : f32 to vector<2x32xf32>
    %145 = arith.addf %144, %143 : vector<2x32xf32>
    %146 = arith.divf %144, %145 : vector<2x32xf32>
    %147 = vector.extract_strided_slice %130 {offsets = [0, 64], sizes = [2, 32], strides = [1, 1]} : vector<2x96xf32> to vector<2x32xf32>
    %148 = vector.extract_strided_slice %129 {offsets = [0, 64], sizes = [2, 32], strides = [1, 1]} : vector<2x96xf32> to vector<2x32xf32>
    %149 = vector.broadcast %4 : vector<1x32xf32> to vector<2x32xf32>
    %150 = arith.addf %148, %149 : vector<2x32xf32>
    %151 = arith.mulf %138, %150 : vector<2x32xf32>
    %152 = arith.addf %147, %151 : vector<2x32xf32>
    %153 = math.tanh %152 : vector<2x32xf32>
    %cst_29 = arith.constant 1.000000e+00 : f32
    %154 = vector.broadcast %cst_29 : f32 to vector<2x32xf32>
    %155 = arith.subf %154, %146 : vector<2x32xf32>
    %156 = arith.mulf %155, %153 : vector<2x32xf32>
    %157 = arith.mulf %146, %128 : vector<2x32xf32>
    %158 = arith.addf %156, %157 : vector<2x32xf32>
    %cst_30 = arith.constant dense<0.000000e+00> : vector<2x96xf32>
    %159 = tpu.matmul %158, %2, %cst_30 {dimension_numbers = #tpu.dot_dimension_numbers<[1], [0], [0], [1], [0, 0, 1, 1], [], []>} : vector<2x32xf32>, vector<32x96xf32>, vector<2x96xf32> -> vector<2x96xf32>
    %160 = vector.extract_strided_slice %7 {offsets = [10, 0], sizes = [2, 96], strides = [1, 1]} : vector<16x96xf32> to vector<2x96xf32>
    %161 = vector.extract_strided_slice %160 {offsets = [0, 0], sizes = [2, 32], strides = [1, 1]} : vector<2x96xf32> to vector<2x32xf32>
    %162 = vector.extract_strided_slice %159 {offsets = [0, 0], sizes = [2, 32], strides = [1, 1]} : vector<2x96xf32> to vector<2x32xf32>
    %163 = arith.addf %161, %162 : vector<2x32xf32>
    %164 = arith.negf %163 : vector<2x32xf32>
    %165 = math.exp %164 : vector<2x32xf32>
    %cst_31 = arith.constant 1.000000e+00 : f32
    %166 = vector.broadcast %cst_31 : f32 to vector<2x32xf32>
    %167 = arith.addf %166, %165 : vector<2x32xf32>
    %168 = arith.divf %166, %167 : vector<2x32xf32>
    %169 = vector.extract_strided_slice %160 {offsets = [0, 32], sizes = [2, 32], strides = [1, 1]} : vector<2x96xf32> to vector<2x32xf32>
    %170 = vector.extract_strided_slice %159 {offsets = [0, 32], sizes = [2, 32], strides = [1, 1]} : vector<2x96xf32> to vector<2x32xf32>
    %171 = arith.addf %169, %170 : vector<2x32xf32>
    %172 = arith.negf %171 : vector<2x32xf32>
    %173 = math.exp %172 : vector<2x32xf32>
    %cst_32 = arith.constant 1.000000e+00 : f32
    %174 = vector.broadcast %cst_32 : f32 to vector<2x32xf32>
    %175 = arith.addf %174, %173 : vector<2x32xf32>
    %176 = arith.divf %174, %175 : vector<2x32xf32>
    %177 = vector.extract_strided_slice %160 {offsets = [0, 64], sizes = [2, 32], strides = [1, 1]} : vector<2x96xf32> to vector<2x32xf32>
    %178 = vector.extract_strided_slice %159 {offsets = [0, 64], sizes = [2, 32], strides = [1, 1]} : vector<2x96xf32> to vector<2x32xf32>
    %179 = vector.broadcast %4 : vector<1x32xf32> to vector<2x32xf32>
    %180 = arith.addf %178, %179 : vector<2x32xf32>
    %181 = arith.mulf %168, %180 : vector<2x32xf32>
    %182 = arith.addf %177, %181 : vector<2x32xf32>
    %183 = math.tanh %182 : vector<2x32xf32>
    %cst_33 = arith.constant 1.000000e+00 : f32
    %184 = vector.broadcast %cst_33 : f32 to vector<2x32xf32>
    %185 = arith.subf %184, %176 : vector<2x32xf32>
    %186 = arith.mulf %185, %183 : vector<2x32xf32>
    %187 = arith.mulf %176, %158 : vector<2x32xf32>
    %188 = arith.addf %186, %187 : vector<2x32xf32>
    %cst_34 = arith.constant dense<0.000000e+00> : vector<2x96xf32>
    %189 = tpu.matmul %188, %2, %cst_34 {dimension_numbers = #tpu.dot_dimension_numbers<[1], [0], [0], [1], [0, 0, 1, 1], [], []>} : vector<2x32xf32>, vector<32x96xf32>, vector<2x96xf32> -> vector<2x96xf32>
    %190 = vector.extract_strided_slice %7 {offsets = [12, 0], sizes = [2, 96], strides = [1, 1]} : vector<16x96xf32> to vector<2x96xf32>
    %191 = vector.extract_strided_slice %190 {offsets = [0, 0], sizes = [2, 32], strides = [1, 1]} : vector<2x96xf32> to vector<2x32xf32>
    %192 = vector.extract_strided_slice %189 {offsets = [0, 0], sizes = [2, 32], strides = [1, 1]} : vector<2x96xf32> to vector<2x32xf32>
    %193 = arith.addf %191, %192 : vector<2x32xf32>
    %194 = arith.negf %193 : vector<2x32xf32>
    %195 = math.exp %194 : vector<2x32xf32>
    %cst_35 = arith.constant 1.000000e+00 : f32
    %196 = vector.broadcast %cst_35 : f32 to vector<2x32xf32>
    %197 = arith.addf %196, %195 : vector<2x32xf32>
    %198 = arith.divf %196, %197 : vector<2x32xf32>
    %199 = vector.extract_strided_slice %190 {offsets = [0, 32], sizes = [2, 32], strides = [1, 1]} : vector<2x96xf32> to vector<2x32xf32>
    %200 = vector.extract_strided_slice %189 {offsets = [0, 32], sizes = [2, 32], strides = [1, 1]} : vector<2x96xf32> to vector<2x32xf32>
    %201 = arith.addf %199, %200 : vector<2x32xf32>
    %202 = arith.negf %201 : vector<2x32xf32>
    %203 = math.exp %202 : vector<2x32xf32>
    %cst_36 = arith.constant 1.000000e+00 : f32
    %204 = vector.broadcast %cst_36 : f32 to vector<2x32xf32>
    %205 = arith.addf %204, %203 : vector<2x32xf32>
    %206 = arith.divf %204, %205 : vector<2x32xf32>
    %207 = vector.extract_strided_slice %190 {offsets = [0, 64], sizes = [2, 32], strides = [1, 1]} : vector<2x96xf32> to vector<2x32xf32>
    %208 = vector.extract_strided_slice %189 {offsets = [0, 64], sizes = [2, 32], strides = [1, 1]} : vector<2x96xf32> to vector<2x32xf32>
    %209 = vector.broadcast %4 : vector<1x32xf32> to vector<2x32xf32>
    %210 = arith.addf %208, %209 : vector<2x32xf32>
    %211 = arith.mulf %198, %210 : vector<2x32xf32>
    %212 = arith.addf %207, %211 : vector<2x32xf32>
    %213 = math.tanh %212 : vector<2x32xf32>
    %cst_37 = arith.constant 1.000000e+00 : f32
    %214 = vector.broadcast %cst_37 : f32 to vector<2x32xf32>
    %215 = arith.subf %214, %206 : vector<2x32xf32>
    %216 = arith.mulf %215, %213 : vector<2x32xf32>
    %217 = arith.mulf %206, %188 : vector<2x32xf32>
    %218 = arith.addf %216, %217 : vector<2x32xf32>
    %cst_38 = arith.constant dense<0.000000e+00> : vector<2x96xf32>
    %219 = tpu.matmul %218, %2, %cst_38 {dimension_numbers = #tpu.dot_dimension_numbers<[1], [0], [0], [1], [0, 0, 1, 1], [], []>} : vector<2x32xf32>, vector<32x96xf32>, vector<2x96xf32> -> vector<2x96xf32>
    %220 = vector.extract_strided_slice %7 {offsets = [14, 0], sizes = [2, 96], strides = [1, 1]} : vector<16x96xf32> to vector<2x96xf32>
    %221 = vector.extract_strided_slice %220 {offsets = [0, 0], sizes = [2, 32], strides = [1, 1]} : vector<2x96xf32> to vector<2x32xf32>
    %222 = vector.extract_strided_slice %219 {offsets = [0, 0], sizes = [2, 32], strides = [1, 1]} : vector<2x96xf32> to vector<2x32xf32>
    %223 = arith.addf %221, %222 : vector<2x32xf32>
    %224 = arith.negf %223 : vector<2x32xf32>
    %225 = math.exp %224 : vector<2x32xf32>
    %cst_39 = arith.constant 1.000000e+00 : f32
    %226 = vector.broadcast %cst_39 : f32 to vector<2x32xf32>
    %227 = arith.addf %226, %225 : vector<2x32xf32>
    %228 = arith.divf %226, %227 : vector<2x32xf32>
    %229 = vector.extract_strided_slice %220 {offsets = [0, 32], sizes = [2, 32], strides = [1, 1]} : vector<2x96xf32> to vector<2x32xf32>
    %230 = vector.extract_strided_slice %219 {offsets = [0, 32], sizes = [2, 32], strides = [1, 1]} : vector<2x96xf32> to vector<2x32xf32>
    %231 = arith.addf %229, %230 : vector<2x32xf32>
    %232 = arith.negf %231 : vector<2x32xf32>
    %233 = math.exp %232 : vector<2x32xf32>
    %cst_40 = arith.constant 1.000000e+00 : f32
    %234 = vector.broadcast %cst_40 : f32 to vector<2x32xf32>
    %235 = arith.addf %234, %233 : vector<2x32xf32>
    %236 = arith.divf %234, %235 : vector<2x32xf32>
    %237 = vector.extract_strided_slice %220 {offsets = [0, 64], sizes = [2, 32], strides = [1, 1]} : vector<2x96xf32> to vector<2x32xf32>
    %238 = vector.extract_strided_slice %219 {offsets = [0, 64], sizes = [2, 32], strides = [1, 1]} : vector<2x96xf32> to vector<2x32xf32>
    %239 = vector.broadcast %4 : vector<1x32xf32> to vector<2x32xf32>
    %240 = arith.addf %238, %239 : vector<2x32xf32>
    %241 = arith.mulf %228, %240 : vector<2x32xf32>
    %242 = arith.addf %237, %241 : vector<2x32xf32>
    %243 = math.tanh %242 : vector<2x32xf32>
    %cst_41 = arith.constant 1.000000e+00 : f32
    %244 = vector.broadcast %cst_41 : f32 to vector<2x32xf32>
    %245 = arith.subf %244, %236 : vector<2x32xf32>
    %246 = arith.mulf %245, %243 : vector<2x32xf32>
    %247 = arith.mulf %236, %218 : vector<2x32xf32>
    %248 = arith.addf %246, %247 : vector<2x32xf32>
    %249 = tpu.concatenate %38, %68, %98, %128, %158, %188, %218, %248 in 0 : vector<2x32xf32>, vector<2x32xf32>, vector<2x32xf32>, vector<2x32xf32>, vector<2x32xf32>, vector<2x32xf32>, vector<2x32xf32>, vector<2x32xf32> -> vector<16x32xf32>
    %c0_42 = arith.constant 0 : index
    %c0_43 = arith.constant 0 : index
    %250 = vector.load %arg6[%c0_42, %c0_43] : memref<32x96xf32, #tpu.memory_space<vmem>>, vector<32x96xf32>
    %c0_44 = arith.constant 0 : index
    %c0_45 = arith.constant 0 : index
    %251 = vector.load %arg7[%c0_44, %c0_45] : memref<32x96xf32, #tpu.memory_space<vmem>>, vector<32x96xf32>
    %c0_46 = arith.constant 0 : index
    %c0_47 = arith.constant 0 : index
    %252 = vector.load %arg8[%c0_46, %c0_47] : memref<1x96xf32, #tpu.memory_space<vmem>>, vector<1x96xf32>
    %c0_48 = arith.constant 0 : index
    %c0_49 = arith.constant 0 : index
    %253 = vector.load %arg9[%c0_48, %c0_49] : memref<1x32xf32, #tpu.memory_space<vmem>>, vector<1x32xf32>
    %cst_50 = arith.constant dense<0.000000e+00> : vector<16x96xf32>
    %254 = tpu.matmul %249, %250, %cst_50 {dimension_numbers = #tpu.dot_dimension_numbers<[1], [0], [0], [1], [0, 0, 1, 1], [], []>} : vector<16x32xf32>, vector<32x96xf32>, vector<16x96xf32> -> vector<16x96xf32>
    %255 = vector.broadcast %252 : vector<1x96xf32> to vector<16x96xf32>
    %256 = arith.addf %254, %255 : vector<16x96xf32>
    %cst_51 = arith.constant 0.000000e+00 : f32
    %257 = vector.broadcast %cst_51 : f32 to vector<2x32xf32>
    %cst_52 = arith.constant dense<0.000000e+00> : vector<2x96xf32>
    %258 = tpu.matmul %257, %251, %cst_52 {dimension_numbers = #tpu.dot_dimension_numbers<[1], [0], [0], [1], [0, 0, 1, 1], [], []>} : vector<2x32xf32>, vector<32x96xf32>, vector<2x96xf32> -> vector<2x96xf32>
    %259 = vector.extract_strided_slice %256 {offsets = [0, 0], sizes = [2, 96], strides = [1, 1]} : vector<16x96xf32> to vector<2x96xf32>
    %260 = vector.extract_strided_slice %259 {offsets = [0, 0], sizes = [2, 32], strides = [1, 1]} : vector<2x96xf32> to vector<2x32xf32>
    %261 = vector.extract_strided_slice %258 {offsets = [0, 0], sizes = [2, 32], strides = [1, 1]} : vector<2x96xf32> to vector<2x32xf32>
    %262 = arith.addf %260, %261 : vector<2x32xf32>
    %263 = arith.negf %262 : vector<2x32xf32>
    %264 = math.exp %263 : vector<2x32xf32>
    %cst_53 = arith.constant 1.000000e+00 : f32
    %265 = vector.broadcast %cst_53 : f32 to vector<2x32xf32>
    %266 = arith.addf %265, %264 : vector<2x32xf32>
    %267 = arith.divf %265, %266 : vector<2x32xf32>
    %268 = vector.extract_strided_slice %259 {offsets = [0, 32], sizes = [2, 32], strides = [1, 1]} : vector<2x96xf32> to vector<2x32xf32>
    %269 = vector.extract_strided_slice %258 {offsets = [0, 32], sizes = [2, 32], strides = [1, 1]} : vector<2x96xf32> to vector<2x32xf32>
    %270 = arith.addf %268, %269 : vector<2x32xf32>
    %271 = arith.negf %270 : vector<2x32xf32>
    %272 = math.exp %271 : vector<2x32xf32>
    %cst_54 = arith.constant 1.000000e+00 : f32
    %273 = vector.broadcast %cst_54 : f32 to vector<2x32xf32>
    %274 = arith.addf %273, %272 : vector<2x32xf32>
    %275 = arith.divf %273, %274 : vector<2x32xf32>
    %276 = vector.extract_strided_slice %259 {offsets = [0, 64], sizes = [2, 32], strides = [1, 1]} : vector<2x96xf32> to vector<2x32xf32>
    %277 = vector.extract_strided_slice %258 {offsets = [0, 64], sizes = [2, 32], strides = [1, 1]} : vector<2x96xf32> to vector<2x32xf32>
    %278 = vector.broadcast %253 : vector<1x32xf32> to vector<2x32xf32>
    %279 = arith.addf %277, %278 : vector<2x32xf32>
    %280 = arith.mulf %267, %279 : vector<2x32xf32>
    %281 = arith.addf %276, %280 : vector<2x32xf32>
    %282 = math.tanh %281 : vector<2x32xf32>
    %cst_55 = arith.constant 1.000000e+00 : f32
    %283 = vector.broadcast %cst_55 : f32 to vector<2x32xf32>
    %284 = arith.subf %283, %275 : vector<2x32xf32>
    %285 = arith.mulf %284, %282 : vector<2x32xf32>
    %286 = arith.mulf %275, %257 : vector<2x32xf32>
    %287 = arith.addf %285, %286 : vector<2x32xf32>
    %cst_56 = arith.constant dense<0.000000e+00> : vector<2x96xf32>
    %288 = tpu.matmul %287, %251, %cst_56 {dimension_numbers = #tpu.dot_dimension_numbers<[1], [0], [0], [1], [0, 0, 1, 1], [], []>} : vector<2x32xf32>, vector<32x96xf32>, vector<2x96xf32> -> vector<2x96xf32>
    %289 = vector.extract_strided_slice %256 {offsets = [2, 0], sizes = [2, 96], strides = [1, 1]} : vector<16x96xf32> to vector<2x96xf32>
    %290 = vector.extract_strided_slice %289 {offsets = [0, 0], sizes = [2, 32], strides = [1, 1]} : vector<2x96xf32> to vector<2x32xf32>
    %291 = vector.extract_strided_slice %288 {offsets = [0, 0], sizes = [2, 32], strides = [1, 1]} : vector<2x96xf32> to vector<2x32xf32>
    %292 = arith.addf %290, %291 : vector<2x32xf32>
    %293 = arith.negf %292 : vector<2x32xf32>
    %294 = math.exp %293 : vector<2x32xf32>
    %cst_57 = arith.constant 1.000000e+00 : f32
    %295 = vector.broadcast %cst_57 : f32 to vector<2x32xf32>
    %296 = arith.addf %295, %294 : vector<2x32xf32>
    %297 = arith.divf %295, %296 : vector<2x32xf32>
    %298 = vector.extract_strided_slice %289 {offsets = [0, 32], sizes = [2, 32], strides = [1, 1]} : vector<2x96xf32> to vector<2x32xf32>
    %299 = vector.extract_strided_slice %288 {offsets = [0, 32], sizes = [2, 32], strides = [1, 1]} : vector<2x96xf32> to vector<2x32xf32>
    %300 = arith.addf %298, %299 : vector<2x32xf32>
    %301 = arith.negf %300 : vector<2x32xf32>
    %302 = math.exp %301 : vector<2x32xf32>
    %cst_58 = arith.constant 1.000000e+00 : f32
    %303 = vector.broadcast %cst_58 : f32 to vector<2x32xf32>
    %304 = arith.addf %303, %302 : vector<2x32xf32>
    %305 = arith.divf %303, %304 : vector<2x32xf32>
    %306 = vector.extract_strided_slice %289 {offsets = [0, 64], sizes = [2, 32], strides = [1, 1]} : vector<2x96xf32> to vector<2x32xf32>
    %307 = vector.extract_strided_slice %288 {offsets = [0, 64], sizes = [2, 32], strides = [1, 1]} : vector<2x96xf32> to vector<2x32xf32>
    %308 = vector.broadcast %253 : vector<1x32xf32> to vector<2x32xf32>
    %309 = arith.addf %307, %308 : vector<2x32xf32>
    %310 = arith.mulf %297, %309 : vector<2x32xf32>
    %311 = arith.addf %306, %310 : vector<2x32xf32>
    %312 = math.tanh %311 : vector<2x32xf32>
    %cst_59 = arith.constant 1.000000e+00 : f32
    %313 = vector.broadcast %cst_59 : f32 to vector<2x32xf32>
    %314 = arith.subf %313, %305 : vector<2x32xf32>
    %315 = arith.mulf %314, %312 : vector<2x32xf32>
    %316 = arith.mulf %305, %287 : vector<2x32xf32>
    %317 = arith.addf %315, %316 : vector<2x32xf32>
    %cst_60 = arith.constant dense<0.000000e+00> : vector<2x96xf32>
    %318 = tpu.matmul %317, %251, %cst_60 {dimension_numbers = #tpu.dot_dimension_numbers<[1], [0], [0], [1], [0, 0, 1, 1], [], []>} : vector<2x32xf32>, vector<32x96xf32>, vector<2x96xf32> -> vector<2x96xf32>
    %319 = vector.extract_strided_slice %256 {offsets = [4, 0], sizes = [2, 96], strides = [1, 1]} : vector<16x96xf32> to vector<2x96xf32>
    %320 = vector.extract_strided_slice %319 {offsets = [0, 0], sizes = [2, 32], strides = [1, 1]} : vector<2x96xf32> to vector<2x32xf32>
    %321 = vector.extract_strided_slice %318 {offsets = [0, 0], sizes = [2, 32], strides = [1, 1]} : vector<2x96xf32> to vector<2x32xf32>
    %322 = arith.addf %320, %321 : vector<2x32xf32>
    %323 = arith.negf %322 : vector<2x32xf32>
    %324 = math.exp %323 : vector<2x32xf32>
    %cst_61 = arith.constant 1.000000e+00 : f32
    %325 = vector.broadcast %cst_61 : f32 to vector<2x32xf32>
    %326 = arith.addf %325, %324 : vector<2x32xf32>
    %327 = arith.divf %325, %326 : vector<2x32xf32>
    %328 = vector.extract_strided_slice %319 {offsets = [0, 32], sizes = [2, 32], strides = [1, 1]} : vector<2x96xf32> to vector<2x32xf32>
    %329 = vector.extract_strided_slice %318 {offsets = [0, 32], sizes = [2, 32], strides = [1, 1]} : vector<2x96xf32> to vector<2x32xf32>
    %330 = arith.addf %328, %329 : vector<2x32xf32>
    %331 = arith.negf %330 : vector<2x32xf32>
    %332 = math.exp %331 : vector<2x32xf32>
    %cst_62 = arith.constant 1.000000e+00 : f32
    %333 = vector.broadcast %cst_62 : f32 to vector<2x32xf32>
    %334 = arith.addf %333, %332 : vector<2x32xf32>
    %335 = arith.divf %333, %334 : vector<2x32xf32>
    %336 = vector.extract_strided_slice %319 {offsets = [0, 64], sizes = [2, 32], strides = [1, 1]} : vector<2x96xf32> to vector<2x32xf32>
    %337 = vector.extract_strided_slice %318 {offsets = [0, 64], sizes = [2, 32], strides = [1, 1]} : vector<2x96xf32> to vector<2x32xf32>
    %338 = vector.broadcast %253 : vector<1x32xf32> to vector<2x32xf32>
    %339 = arith.addf %337, %338 : vector<2x32xf32>
    %340 = arith.mulf %327, %339 : vector<2x32xf32>
    %341 = arith.addf %336, %340 : vector<2x32xf32>
    %342 = math.tanh %341 : vector<2x32xf32>
    %cst_63 = arith.constant 1.000000e+00 : f32
    %343 = vector.broadcast %cst_63 : f32 to vector<2x32xf32>
    %344 = arith.subf %343, %335 : vector<2x32xf32>
    %345 = arith.mulf %344, %342 : vector<2x32xf32>
    %346 = arith.mulf %335, %317 : vector<2x32xf32>
    %347 = arith.addf %345, %346 : vector<2x32xf32>
    %cst_64 = arith.constant dense<0.000000e+00> : vector<2x96xf32>
    %348 = tpu.matmul %347, %251, %cst_64 {dimension_numbers = #tpu.dot_dimension_numbers<[1], [0], [0], [1], [0, 0, 1, 1], [], []>} : vector<2x32xf32>, vector<32x96xf32>, vector<2x96xf32> -> vector<2x96xf32>
    %349 = vector.extract_strided_slice %256 {offsets = [6, 0], sizes = [2, 96], strides = [1, 1]} : vector<16x96xf32> to vector<2x96xf32>
    %350 = vector.extract_strided_slice %349 {offsets = [0, 0], sizes = [2, 32], strides = [1, 1]} : vector<2x96xf32> to vector<2x32xf32>
    %351 = vector.extract_strided_slice %348 {offsets = [0, 0], sizes = [2, 32], strides = [1, 1]} : vector<2x96xf32> to vector<2x32xf32>
    %352 = arith.addf %350, %351 : vector<2x32xf32>
    %353 = arith.negf %352 : vector<2x32xf32>
    %354 = math.exp %353 : vector<2x32xf32>
    %cst_65 = arith.constant 1.000000e+00 : f32
    %355 = vector.broadcast %cst_65 : f32 to vector<2x32xf32>
    %356 = arith.addf %355, %354 : vector<2x32xf32>
    %357 = arith.divf %355, %356 : vector<2x32xf32>
    %358 = vector.extract_strided_slice %349 {offsets = [0, 32], sizes = [2, 32], strides = [1, 1]} : vector<2x96xf32> to vector<2x32xf32>
    %359 = vector.extract_strided_slice %348 {offsets = [0, 32], sizes = [2, 32], strides = [1, 1]} : vector<2x96xf32> to vector<2x32xf32>
    %360 = arith.addf %358, %359 : vector<2x32xf32>
    %361 = arith.negf %360 : vector<2x32xf32>
    %362 = math.exp %361 : vector<2x32xf32>
    %cst_66 = arith.constant 1.000000e+00 : f32
    %363 = vector.broadcast %cst_66 : f32 to vector<2x32xf32>
    %364 = arith.addf %363, %362 : vector<2x32xf32>
    %365 = arith.divf %363, %364 : vector<2x32xf32>
    %366 = vector.extract_strided_slice %349 {offsets = [0, 64], sizes = [2, 32], strides = [1, 1]} : vector<2x96xf32> to vector<2x32xf32>
    %367 = vector.extract_strided_slice %348 {offsets = [0, 64], sizes = [2, 32], strides = [1, 1]} : vector<2x96xf32> to vector<2x32xf32>
    %368 = vector.broadcast %253 : vector<1x32xf32> to vector<2x32xf32>
    %369 = arith.addf %367, %368 : vector<2x32xf32>
    %370 = arith.mulf %357, %369 : vector<2x32xf32>
    %371 = arith.addf %366, %370 : vector<2x32xf32>
    %372 = math.tanh %371 : vector<2x32xf32>
    %cst_67 = arith.constant 1.000000e+00 : f32
    %373 = vector.broadcast %cst_67 : f32 to vector<2x32xf32>
    %374 = arith.subf %373, %365 : vector<2x32xf32>
    %375 = arith.mulf %374, %372 : vector<2x32xf32>
    %376 = arith.mulf %365, %347 : vector<2x32xf32>
    %377 = arith.addf %375, %376 : vector<2x32xf32>
    %cst_68 = arith.constant dense<0.000000e+00> : vector<2x96xf32>
    %378 = tpu.matmul %377, %251, %cst_68 {dimension_numbers = #tpu.dot_dimension_numbers<[1], [0], [0], [1], [0, 0, 1, 1], [], []>} : vector<2x32xf32>, vector<32x96xf32>, vector<2x96xf32> -> vector<2x96xf32>
    %379 = vector.extract_strided_slice %256 {offsets = [8, 0], sizes = [2, 96], strides = [1, 1]} : vector<16x96xf32> to vector<2x96xf32>
    %380 = vector.extract_strided_slice %379 {offsets = [0, 0], sizes = [2, 32], strides = [1, 1]} : vector<2x96xf32> to vector<2x32xf32>
    %381 = vector.extract_strided_slice %378 {offsets = [0, 0], sizes = [2, 32], strides = [1, 1]} : vector<2x96xf32> to vector<2x32xf32>
    %382 = arith.addf %380, %381 : vector<2x32xf32>
    %383 = arith.negf %382 : vector<2x32xf32>
    %384 = math.exp %383 : vector<2x32xf32>
    %cst_69 = arith.constant 1.000000e+00 : f32
    %385 = vector.broadcast %cst_69 : f32 to vector<2x32xf32>
    %386 = arith.addf %385, %384 : vector<2x32xf32>
    %387 = arith.divf %385, %386 : vector<2x32xf32>
    %388 = vector.extract_strided_slice %379 {offsets = [0, 32], sizes = [2, 32], strides = [1, 1]} : vector<2x96xf32> to vector<2x32xf32>
    %389 = vector.extract_strided_slice %378 {offsets = [0, 32], sizes = [2, 32], strides = [1, 1]} : vector<2x96xf32> to vector<2x32xf32>
    %390 = arith.addf %388, %389 : vector<2x32xf32>
    %391 = arith.negf %390 : vector<2x32xf32>
    %392 = math.exp %391 : vector<2x32xf32>
    %cst_70 = arith.constant 1.000000e+00 : f32
    %393 = vector.broadcast %cst_70 : f32 to vector<2x32xf32>
    %394 = arith.addf %393, %392 : vector<2x32xf32>
    %395 = arith.divf %393, %394 : vector<2x32xf32>
    %396 = vector.extract_strided_slice %379 {offsets = [0, 64], sizes = [2, 32], strides = [1, 1]} : vector<2x96xf32> to vector<2x32xf32>
    %397 = vector.extract_strided_slice %378 {offsets = [0, 64], sizes = [2, 32], strides = [1, 1]} : vector<2x96xf32> to vector<2x32xf32>
    %398 = vector.broadcast %253 : vector<1x32xf32> to vector<2x32xf32>
    %399 = arith.addf %397, %398 : vector<2x32xf32>
    %400 = arith.mulf %387, %399 : vector<2x32xf32>
    %401 = arith.addf %396, %400 : vector<2x32xf32>
    %402 = math.tanh %401 : vector<2x32xf32>
    %cst_71 = arith.constant 1.000000e+00 : f32
    %403 = vector.broadcast %cst_71 : f32 to vector<2x32xf32>
    %404 = arith.subf %403, %395 : vector<2x32xf32>
    %405 = arith.mulf %404, %402 : vector<2x32xf32>
    %406 = arith.mulf %395, %377 : vector<2x32xf32>
    %407 = arith.addf %405, %406 : vector<2x32xf32>
    %cst_72 = arith.constant dense<0.000000e+00> : vector<2x96xf32>
    %408 = tpu.matmul %407, %251, %cst_72 {dimension_numbers = #tpu.dot_dimension_numbers<[1], [0], [0], [1], [0, 0, 1, 1], [], []>} : vector<2x32xf32>, vector<32x96xf32>, vector<2x96xf32> -> vector<2x96xf32>
    %409 = vector.extract_strided_slice %256 {offsets = [10, 0], sizes = [2, 96], strides = [1, 1]} : vector<16x96xf32> to vector<2x96xf32>
    %410 = vector.extract_strided_slice %409 {offsets = [0, 0], sizes = [2, 32], strides = [1, 1]} : vector<2x96xf32> to vector<2x32xf32>
    %411 = vector.extract_strided_slice %408 {offsets = [0, 0], sizes = [2, 32], strides = [1, 1]} : vector<2x96xf32> to vector<2x32xf32>
    %412 = arith.addf %410, %411 : vector<2x32xf32>
    %413 = arith.negf %412 : vector<2x32xf32>
    %414 = math.exp %413 : vector<2x32xf32>
    %cst_73 = arith.constant 1.000000e+00 : f32
    %415 = vector.broadcast %cst_73 : f32 to vector<2x32xf32>
    %416 = arith.addf %415, %414 : vector<2x32xf32>
    %417 = arith.divf %415, %416 : vector<2x32xf32>
    %418 = vector.extract_strided_slice %409 {offsets = [0, 32], sizes = [2, 32], strides = [1, 1]} : vector<2x96xf32> to vector<2x32xf32>
    %419 = vector.extract_strided_slice %408 {offsets = [0, 32], sizes = [2, 32], strides = [1, 1]} : vector<2x96xf32> to vector<2x32xf32>
    %420 = arith.addf %418, %419 : vector<2x32xf32>
    %421 = arith.negf %420 : vector<2x32xf32>
    %422 = math.exp %421 : vector<2x32xf32>
    %cst_74 = arith.constant 1.000000e+00 : f32
    %423 = vector.broadcast %cst_74 : f32 to vector<2x32xf32>
    %424 = arith.addf %423, %422 : vector<2x32xf32>
    %425 = arith.divf %423, %424 : vector<2x32xf32>
    %426 = vector.extract_strided_slice %409 {offsets = [0, 64], sizes = [2, 32], strides = [1, 1]} : vector<2x96xf32> to vector<2x32xf32>
    %427 = vector.extract_strided_slice %408 {offsets = [0, 64], sizes = [2, 32], strides = [1, 1]} : vector<2x96xf32> to vector<2x32xf32>
    %428 = vector.broadcast %253 : vector<1x32xf32> to vector<2x32xf32>
    %429 = arith.addf %427, %428 : vector<2x32xf32>
    %430 = arith.mulf %417, %429 : vector<2x32xf32>
    %431 = arith.addf %426, %430 : vector<2x32xf32>
    %432 = math.tanh %431 : vector<2x32xf32>
    %cst_75 = arith.constant 1.000000e+00 : f32
    %433 = vector.broadcast %cst_75 : f32 to vector<2x32xf32>
    %434 = arith.subf %433, %425 : vector<2x32xf32>
    %435 = arith.mulf %434, %432 : vector<2x32xf32>
    %436 = arith.mulf %425, %407 : vector<2x32xf32>
    %437 = arith.addf %435, %436 : vector<2x32xf32>
    %cst_76 = arith.constant dense<0.000000e+00> : vector<2x96xf32>
    %438 = tpu.matmul %437, %251, %cst_76 {dimension_numbers = #tpu.dot_dimension_numbers<[1], [0], [0], [1], [0, 0, 1, 1], [], []>} : vector<2x32xf32>, vector<32x96xf32>, vector<2x96xf32> -> vector<2x96xf32>
    %439 = vector.extract_strided_slice %256 {offsets = [12, 0], sizes = [2, 96], strides = [1, 1]} : vector<16x96xf32> to vector<2x96xf32>
    %440 = vector.extract_strided_slice %439 {offsets = [0, 0], sizes = [2, 32], strides = [1, 1]} : vector<2x96xf32> to vector<2x32xf32>
    %441 = vector.extract_strided_slice %438 {offsets = [0, 0], sizes = [2, 32], strides = [1, 1]} : vector<2x96xf32> to vector<2x32xf32>
    %442 = arith.addf %440, %441 : vector<2x32xf32>
    %443 = arith.negf %442 : vector<2x32xf32>
    %444 = math.exp %443 : vector<2x32xf32>
    %cst_77 = arith.constant 1.000000e+00 : f32
    %445 = vector.broadcast %cst_77 : f32 to vector<2x32xf32>
    %446 = arith.addf %445, %444 : vector<2x32xf32>
    %447 = arith.divf %445, %446 : vector<2x32xf32>
    %448 = vector.extract_strided_slice %439 {offsets = [0, 32], sizes = [2, 32], strides = [1, 1]} : vector<2x96xf32> to vector<2x32xf32>
    %449 = vector.extract_strided_slice %438 {offsets = [0, 32], sizes = [2, 32], strides = [1, 1]} : vector<2x96xf32> to vector<2x32xf32>
    %450 = arith.addf %448, %449 : vector<2x32xf32>
    %451 = arith.negf %450 : vector<2x32xf32>
    %452 = math.exp %451 : vector<2x32xf32>
    %cst_78 = arith.constant 1.000000e+00 : f32
    %453 = vector.broadcast %cst_78 : f32 to vector<2x32xf32>
    %454 = arith.addf %453, %452 : vector<2x32xf32>
    %455 = arith.divf %453, %454 : vector<2x32xf32>
    %456 = vector.extract_strided_slice %439 {offsets = [0, 64], sizes = [2, 32], strides = [1, 1]} : vector<2x96xf32> to vector<2x32xf32>
    %457 = vector.extract_strided_slice %438 {offsets = [0, 64], sizes = [2, 32], strides = [1, 1]} : vector<2x96xf32> to vector<2x32xf32>
    %458 = vector.broadcast %253 : vector<1x32xf32> to vector<2x32xf32>
    %459 = arith.addf %457, %458 : vector<2x32xf32>
    %460 = arith.mulf %447, %459 : vector<2x32xf32>
    %461 = arith.addf %456, %460 : vector<2x32xf32>
    %462 = math.tanh %461 : vector<2x32xf32>
    %cst_79 = arith.constant 1.000000e+00 : f32
    %463 = vector.broadcast %cst_79 : f32 to vector<2x32xf32>
    %464 = arith.subf %463, %455 : vector<2x32xf32>
    %465 = arith.mulf %464, %462 : vector<2x32xf32>
    %466 = arith.mulf %455, %437 : vector<2x32xf32>
    %467 = arith.addf %465, %466 : vector<2x32xf32>
    %cst_80 = arith.constant dense<0.000000e+00> : vector<2x96xf32>
    %468 = tpu.matmul %467, %251, %cst_80 {dimension_numbers = #tpu.dot_dimension_numbers<[1], [0], [0], [1], [0, 0, 1, 1], [], []>} : vector<2x32xf32>, vector<32x96xf32>, vector<2x96xf32> -> vector<2x96xf32>
    %469 = vector.extract_strided_slice %256 {offsets = [14, 0], sizes = [2, 96], strides = [1, 1]} : vector<16x96xf32> to vector<2x96xf32>
    %470 = vector.extract_strided_slice %469 {offsets = [0, 0], sizes = [2, 32], strides = [1, 1]} : vector<2x96xf32> to vector<2x32xf32>
    %471 = vector.extract_strided_slice %468 {offsets = [0, 0], sizes = [2, 32], strides = [1, 1]} : vector<2x96xf32> to vector<2x32xf32>
    %472 = arith.addf %470, %471 : vector<2x32xf32>
    %473 = arith.negf %472 : vector<2x32xf32>
    %474 = math.exp %473 : vector<2x32xf32>
    %cst_81 = arith.constant 1.000000e+00 : f32
    %475 = vector.broadcast %cst_81 : f32 to vector<2x32xf32>
    %476 = arith.addf %475, %474 : vector<2x32xf32>
    %477 = arith.divf %475, %476 : vector<2x32xf32>
    %478 = vector.extract_strided_slice %469 {offsets = [0, 32], sizes = [2, 32], strides = [1, 1]} : vector<2x96xf32> to vector<2x32xf32>
    %479 = vector.extract_strided_slice %468 {offsets = [0, 32], sizes = [2, 32], strides = [1, 1]} : vector<2x96xf32> to vector<2x32xf32>
    %480 = arith.addf %478, %479 : vector<2x32xf32>
    %481 = arith.negf %480 : vector<2x32xf32>
    %482 = math.exp %481 : vector<2x32xf32>
    %cst_82 = arith.constant 1.000000e+00 : f32
    %483 = vector.broadcast %cst_82 : f32 to vector<2x32xf32>
    %484 = arith.addf %483, %482 : vector<2x32xf32>
    %485 = arith.divf %483, %484 : vector<2x32xf32>
    %486 = vector.extract_strided_slice %469 {offsets = [0, 64], sizes = [2, 32], strides = [1, 1]} : vector<2x96xf32> to vector<2x32xf32>
    %487 = vector.extract_strided_slice %468 {offsets = [0, 64], sizes = [2, 32], strides = [1, 1]} : vector<2x96xf32> to vector<2x32xf32>
    %488 = vector.broadcast %253 : vector<1x32xf32> to vector<2x32xf32>
    %489 = arith.addf %487, %488 : vector<2x32xf32>
    %490 = arith.mulf %477, %489 : vector<2x32xf32>
    %491 = arith.addf %486, %490 : vector<2x32xf32>
    %492 = math.tanh %491 : vector<2x32xf32>
    %cst_83 = arith.constant 1.000000e+00 : f32
    %493 = vector.broadcast %cst_83 : f32 to vector<2x32xf32>
    %494 = arith.subf %493, %485 : vector<2x32xf32>
    %495 = arith.mulf %494, %492 : vector<2x32xf32>
    %496 = arith.mulf %485, %467 : vector<2x32xf32>
    %497 = arith.addf %495, %496 : vector<2x32xf32>
    %498 = tpu.concatenate %287, %317, %347, %377, %407, %437, %467, %497 in 0 : vector<2x32xf32>, vector<2x32xf32>, vector<2x32xf32>, vector<2x32xf32>, vector<2x32xf32>, vector<2x32xf32>, vector<2x32xf32>, vector<2x32xf32> -> vector<16x32xf32>
    %c0_84 = arith.constant 0 : index
    %c0_85 = arith.constant 0 : index
    %499 = vector.load %arg10[%c0_84, %c0_85] : memref<32x10xf32, #tpu.memory_space<vmem>>, vector<32x10xf32>
    %cst_86 = arith.constant dense<0.000000e+00> : vector<16x10xf32>
    %500 = tpu.matmul %498, %499, %cst_86 {dimension_numbers = #tpu.dot_dimension_numbers<[1], [0], [0], [1], [0, 0, 1, 1], [], []>} : vector<16x32xf32>, vector<32x10xf32>, vector<16x10xf32> -> vector<16x10xf32>
    %c0_87 = arith.constant 0 : index
    %c0_88 = arith.constant 0 : index
    %501 = vector.load %arg11[%c0_87, %c0_88] : memref<1x10xf32, #tpu.memory_space<vmem>>, vector<1x10xf32>
    %502 = vector.broadcast %501 : vector<1x10xf32> to vector<16x10xf32>
    %503 = arith.addf %500, %502 : vector<16x10xf32>
    %c0_89 = arith.constant 0 : index
    %c0_90 = arith.constant 0 : index
    %504 = vector.load %arg12[%c0_89, %c0_90] : memref<16x10xf32, #tpu.memory_space<vmem>>, vector<16x10xf32>
    tpu.vector_store %arg12[%c0_89, %c0_90], %503 {strides = array<i32>} : memref<16x10xf32, #tpu.memory_space<vmem>>, vector<16x10xf32>,
    return
  }
  func.func @transform_0(%arg0: i32) -> (i32, i32) {
    %c0_i32 = arith.constant 0 : i32
    %c0_i32_0 = arith.constant 0 : i32
    %c0_i32_1 = arith.constant 0 : i32
    return %c0_i32, %c0_i32_0 : i32, i32
  }
  func.func @transform_1(%arg0: i32) -> (i32, i32) {
    %c0_i32 = arith.constant 0 : i32
    %c0_i32_0 = arith.constant 0 : i32
    %c0_i32_1 = arith.constant 0 : i32
    return %c0_i32, %c0_i32_0 : i32, i32
  }
  func.func @transform_2(%arg0: i32) -> (i32, i32) {
    %c0_i32 = arith.constant 0 : i32
    %c0_i32_0 = arith.constant 0 : i32
    %c0_i32_1 = arith.constant 0 : i32
    return %c0_i32, %c0_i32_0 : i32, i32
  }
  func.func @transform_3(%arg0: i32) -> (i32, i32) {
    %c0_i32 = arith.constant 0 : i32
    %c0_i32_0 = arith.constant 0 : i32
    %c0_i32_1 = arith.constant 0 : i32
    return %c0_i32, %c0_i32_0 : i32, i32
  }
  func.func @transform_4(%arg0: i32) -> (i32, i32) {
    %c0_i32 = arith.constant 0 : i32
    %c0_i32_0 = arith.constant 0 : i32
    %c0_i32_1 = arith.constant 0 : i32
    return %c0_i32, %c0_i32_0 : i32, i32
  }
  func.func @transform_5(%arg0: i32) -> (i32, i32) {
    %c0_i32 = arith.constant 0 : i32
    %c0_i32_0 = arith.constant 0 : i32
    %c0_i32_1 = arith.constant 0 : i32
    return %c0_i32, %c0_i32_0 : i32, i32
  }
  func.func @transform_6(%arg0: i32) -> (i32, i32) {
    %c0_i32 = arith.constant 0 : i32
    %c0_i32_0 = arith.constant 0 : i32
    %c0_i32_1 = arith.constant 0 : i32
    return %c0_i32, %c0_i32_0 : i32, i32
  }
  func.func @transform_7(%arg0: i32) -> (i32, i32) {
    %c0_i32 = arith.constant 0 : i32
    %c0_i32_0 = arith.constant 0 : i32
    %c0_i32_1 = arith.constant 0 : i32
    return %c0_i32, %c0_i32_0 : i32, i32
  }
  func.func @transform_8(%arg0: i32) -> (i32, i32) {
    %c0_i32 = arith.constant 0 : i32
    %c0_i32_0 = arith.constant 0 : i32
    %c0_i32_1 = arith.constant 0 : i32
    return %c0_i32, %c0_i32_0 : i32, i32
  }
  func.func @transform_9(%arg0: i32) -> (i32, i32) {
    %c0_i32 = arith.constant 0 : i32
    %c0_i32_0 = arith.constant 0 : i32
    %c0_i32_1 = arith.constant 0 : i32
    return %c0_i32, %c0_i32_0 : i32, i32
  }
  func.func @transform_10(%arg0: i32) -> (i32, i32) {
    %c0_i32 = arith.constant 0 : i32
    %c0_i32_0 = arith.constant 0 : i32
    %c0_i32_1 = arith.constant 0 : i32
    return %c0_i32, %c0_i32_0 : i32, i32
  }
  func.func @transform_11(%arg0: i32) -> (i32, i32) {
    %c0_i32 = arith.constant 0 : i32
    %c0_i32_0 = arith.constant 0 : i32
    %c0_i32_1 = arith.constant 0 : i32
    return %c0_i32, %c0_i32_0 : i32, i32
  }
}

</mosaic_0001>

<bundles_post_ra>
// kernel: tpu_custom_call.1
= control target key start
LH: loop header
LB: loop body
LE: loop exit
PB: predicated region body
PF: predicated region fallthrough
CT: control target
= control target key end

     0   :  { %16 = vsyncpa [#allocation3], 0  ;;  %s3385_s0 = inlined_call_operand.hbm [shape: f32[16,16], index: 0, kind: input, shape index: {}]   ;;  %s3386_s1 = inlined_call_operand.hbm [shape: f32[16,96], index: 1, kind: input, shape index: {}]   ;;  %s3387_s2 = inlined_call_operand.vmem [shape: f32[32,96], index: 2, kind: input, shape index: {}]   ;;  %s3388_s3 = inlined_call_operand.vmem [shape: f32[1,96], index: 3, kind: input, shape index: {}]   ;;  %s3389_s4 = inlined_call_operand.vmem [shape: f32[1,32], index: 4, kind: input, shape index: {}]   ;;  %s3390_s5 = inlined_call_operand.vmem [shape: f32[32,96], index: 5, kind: input, shape index: {}]   ;;  %s3391_s6 = inlined_call_operand.hbm [shape: f32[32,96], index: 6, kind: input, shape index: {}]   ;;  %s3392_s7 = inlined_call_operand.hbm [shape: f32[1,96], index: 7, kind: input, shape index: {}]   ;;  %s3393_s8 = inlined_call_operand.hbm [shape: f32[1,32], index: 8, kind: input, shape index: {}]   ;;  %s3394_s9 = inlined_call_operand.vmem [shape: f32[32,10], index: 9, kind: input, shape index: {}]   ;;  %s3395_s10 = inlined_call_operand.vmem [shape: f32[1,10], index: 10, kind: input, shape index: {}]   ;;  %s3396_s11 = inlined_call_operand.hbm [shape: f32[16,10], index: 11, kind: output, shape index: {}]  }
   0x1   :  { %17 = vsyncpa [#allocation6], 0 }
   0x2   :  { %18 = vsyncpa [#allocation9], 0 }
   0x3   :  { %19 = vsyncpa [#allocation4], 0  ;;  %s2868_s17 = smov [#allocation5]   ;;  %s2869_s19 = smov [#allocation8]  }
   0x4   :  { %s37_s18 = sshll.u32 %s2868_s17, 4  ;;  %s70_s20 = sshll.u32 %s2869_s19, 4  ;;  %s38_s18 = int_to_ptr.vmem [resolvable:$true] %s37_s18  ;;  %s2941_s20 = int_to_ptr.vmem [resolvable:$true] %s70_s20 }
   0x5   :  { %s2728_s23 = scalar_lea.hbm %s3386_s1, 256 }
   0x6   :  { %p2729_p0 = scmp.ne.s32.totalorder %s3386_s1, %s2728_s23  ;;  %p2732_p1 = scmp.lt.u32.totalorder %s2728_s23, %s3386_s1 }
   0x8   :  { %p2734_p2 = pnand %p2732_p1, %p2729_p0 }
   0xa   :  { %2737 = shalt.err (!%p2734_p2)
}
   0xb   :  { %s2738_s28 = scalar_lea.vmem %s38_s18, 256  ;;  %p2743_p4 = scmp.lt.s32.totalorder %s38_s18, %s38_s18 }
   0xc   :  { %p2739_p3 = scmp.ne.s32.totalorder %s38_s18, %s2738_s28  ;;  %p2744_p5 = scmp.lt.s32.totalorder %s2738_s28, %s2738_s28 }
   0xe   :  { %p2745_p6 = por %p2744_p5, %p2743_p4 }
  0x10   :  { %p2746_p7 = pnand %p2745_p6, %p2739_p3 }
  0x12   :  { %2749 = shalt.err (!%p2746_p7)
}
  0x13   :  { %s2870_s29 = smov 128   ;;  %s2871_s30 = smov 8  }
  0x14   :  { %43 = dma.hbm_to_vmem [thread:$0]  %s3386_s1, 256, %s38_s18, [#allocation6], %s2870_s29, %s2870_s29, %s2871_s30  }
  0x15   :  { %s2750_s16 = scalar_lea.hbm %s3392_s7, 16 }
  0x16   :  { %p2751_p8 = scmp.ne.s32.totalorder %s3392_s7, %s2750_s16  ;;  %p2754_p9 = scmp.lt.u32.totalorder %s2750_s16, %s3392_s7 }
  0x18   :  { %p2756_p10 = pnand %p2754_p9, %p2751_p8 }
  0x1a   :  { %2759 = shalt.err (!%p2756_p10)
}
  0x1b   :  { %s2760_s23 = scalar_lea.vmem %s2941_s20, 16  ;;  %s2764_s1 = scalar_lea.vmem %s2941_s20, 32 }
  0x1c   :  { %p2761_p11 = scmp.ne.s32.totalorder %s2941_s20, %s2760_s23  ;;  %p2765_p12 = scmp.lt.s32.totalorder %s2941_s20, %s2941_s20 }
  0x1d   :  { %p2766_p13 = scmp.lt.s32.totalorder %s2764_s1, %s2760_s23 }
  0x1f   :  { %p2767_p0 = por %p2766_p13, %p2765_p12 }
  0x21   :  { %p2768_p1 = pnand %p2767_p0, %p2761_p11 }
  0x23   :  { %2771 = shalt.err (!%p2768_p1)
}
  0x24   :  { %73 = dma.hbm_to_vmem [thread:$0]  %s3392_s7, 16, %s2941_s20, [#allocation9]  }
  0x25   :  { %s2872_s25 = smov [#allocation2]   ;;  %s2873_s27 = smov [#allocation7]  }
  0x26   :  { %s25_s26 = sshll.u32 %s2872_s25, 4  ;;  %s57_s28 = sshll.u32 %s2873_s27, 4  ;;  %s26_s26 = int_to_ptr.vmem [resolvable:$true] %s25_s26  ;;  %s2976_s28 = int_to_ptr.vmem [resolvable:$true] %s57_s28 }
  0x27   :  { %s2772_s14 = scalar_lea.hbm %s3385_s0, 256 }
  0x28   :  { %p2773_p2 = scmp.ne.s32.totalorder %s3385_s0, %s2772_s14  ;;  %p2776_p3 = scmp.lt.u32.totalorder %s2772_s14, %s3385_s0 }
  0x2a   :  { %p2778_p4 = pnand %p2776_p3, %p2773_p2 }
  0x2c   :  { %2781 = shalt.err (!%p2778_p4)
}
  0x2d   :  { %s2782_s7 = scalar_lea.vmem %s26_s26, 256  ;;  %p2787_p6 = scmp.lt.s32.totalorder %s26_s26, %s26_s26 }
  0x2e   :  { %p2783_p5 = scmp.ne.s32.totalorder %s26_s26, %s2782_s7  ;;  %p2788_p7 = scmp.lt.s32.totalorder %s2782_s7, %s2782_s7 }
  0x30   :  { %p2789_p8 = por %p2788_p7, %p2787_p6 }
  0x32   :  { %p2790_p9 = pnand %p2789_p8, %p2783_p5 }
  0x34   :  { %2793 = shalt.err (!%p2790_p9)
}
  0x35   :  { %31 = dma.hbm_to_vmem [thread:$0]  %s3385_s0, 256, %s26_s26, [#allocation3], %s2870_s29, %s2870_s29, %s2871_s30  }
  0x36   :  { %s2794_s1 = scalar_lea.hbm %s3391_s6, 512 }
  0x37   :  { %p2795_p10 = scmp.ne.s32.totalorder %s3391_s6, %s2794_s1  ;;  %p2798_p11 = scmp.lt.u32.totalorder %s2794_s1, %s3391_s6 }
  0x39   :  { %p2800_p12 = pnand %p2798_p11, %p2795_p10 }
  0x3b   :  { %2803 = shalt.err (!%p2800_p12)
}
  0x3c   :  { %s2804_s12 = scalar_lea.vmem %s2976_s28, 512  ;;  %p2809_p0 = scmp.lt.s32.totalorder %s2976_s28, %s2976_s28 }
  0x3d   :  { %p2805_p13 = scmp.ne.s32.totalorder %s2976_s28, %s2804_s12  ;;  %p2810_p1 = scmp.lt.s32.totalorder %s2804_s12, %s2804_s12 }
  0x3f   :  { %p2811_p2 = por %p2810_p1, %p2809_p0 }
  0x41   :  { %p2812_p3 = pnand %p2811_p2, %p2805_p13 }
  0x43   :  { %2815 = shalt.err (!%p2812_p3)
}
  0x44   :  { %63 = dma.hbm_to_vmem [thread:$0]  %s3391_s6, 512, %s2976_s28, [#allocation6], %s2870_s29, %s2870_s29, %s2871_s30  }
  0x45   :  { %s2874_s13 = smov [#allocation10]   ;;  %s2816_s17 = scalar_lea.hbm %s3393_s8, 16 }
  0x46   :  { %s80_s14 = sshll.u32 %s2874_s13, 4  ;;  %p2817_p4 = scmp.ne.s32.totalorder %s3393_s8, %s2816_s17  ;;  %s81_s14 = int_to_ptr.vmem [resolvable:$true] %s80_s14 }
  0x47   :  { %p2820_p5 = scmp.lt.u32.totalorder %s2816_s17, %s3393_s8 }
  0x49   :  { %p2822_p6 = pnand %p2820_p5, %p2817_p4 }
  0x4b   :  { %2825 = shalt.err (!%p2822_p6)
}
  0x4c   :  { %s2826_s22 = scalar_lea.vmem %s81_s14, 16  ;;  %s2830_s6 = scalar_lea.vmem %s81_s14, 32 }
  0x4d   :  { %p2827_p7 = scmp.ne.s32.totalorder %s81_s14, %s2826_s22  ;;  %p2831_p8 = scmp.lt.s32.totalorder %s81_s14, %s81_s14 }
  0x4e   :  { %p2832_p9 = scmp.lt.s32.totalorder %s2830_s6, %s2826_s22 }
  0x50   :  { %p2833_p10 = por %p2832_p9, %p2831_p8 }
  0x52   :  { %p2834_p11 = pnand %p2833_p10, %p2827_p7 }
  0x54   :  { %2837 = shalt.err (!%p2834_p11)
}
  0x55   :  { %83 = dma.hbm_to_vmem [thread:$0]  %s3393_s8, 16, %s81_s14, [#allocation9]  }
  0x56   :  { %2860 = dma.done.wait [#allocation3], 256  }
  0x57   :  { %2861 = vsyncadd [#allocation3], 4294967040 }
  0x58   :  { %2862 = dma.done.wait [#allocation6], 768  }
  0x59   :  { %2863 = vsyncadd [#allocation6], 4294966528 }
  0x5a   :  { %2864 = dma.done.wait [#allocation9], 32  }
  0x5b   :  { %2865 = vsyncadd [#allocation9], 4294967264  ;;  %v2875_v0 = vmov 0.0|0.0   ;;  %vm2876_vm0 = vmmov 0   ;;  %v2877_v1 = vmov 0.0   ;;  %vm119_vm1 = vcmask 130048  }
  0x5c   :  { %2507 = vmatprep.subr.bf16.mxu1 %v2875_v0  ;;  %2313 = vmatprep.mubr.msk.f32.mxu1 %vm2876_vm0, %v2877_v1  ;;  %v105_v2 = vld [vmem:[#allocation5] sm:$0xff]  ;;  %v106_v3 = vld [vmem:[#allocation5 + $0x8] sm:$0xff]  ;;  %v107_v4 = vld [vmem:[%s3387_s2] sm:$0xff]  ;;  %s2878_s14 = smov 64   ;;  %vm201_vm2 = vcmask 261120   ;;  %vm1066_vm3 = vcmask 1041408  }
  0x5d   :  { %v2503_v5 = vpack.c.bf16 %v106_v3, %v105_v2  ;;  %v108_v6 = vld [vmem:[%s3387_s2 + $0x8] sm:$0xff]  ;;  %v103_v7 = vld [vmem:[#allocation2] sm:$0xff]  ;;  %v109_v9 = vld [vmem:[%s3387_s2 + $0x10] sm:$0xff]  ;;  %vm1068_vm4 = vcmask 1043456   ;;  %vm1070_vm5 = vcmask 1045504   ;;  %s2880_s27 = smov [#allocation11]  }
  0x5e   :  { %v3034_v8 = vpack.c.bf16 %v108_v6, %v107_v4  ;;  %2302 = vmatprep.mubr.msk.f32.mxu0 %vm119_vm1, %v103_v7  ;;  %v110_v10 = vld [vmem:[%s3387_s2 + $0x18] sm:$0xff]  ;;  %v2165_v11 = vld [vmem:[%s3389_s4] ss:$0 sm:$0xff]  ;;  %v104_v12 = vld [vmem:[#allocation2 + $0x8] sm:$0xff]  ;;  %s2147_s12 = sshll.u32 %s2880_s27, 4  ;;  %vm2139_vm6 = vcmask 80896   ;;  %s2148_s12 = int_to_ptr.vmem [resolvable:$true] %s2147_s12 }
  0x5f   :  { %2504 = vmatprep.subr.bf16.mxu0 %v2503_v5  ;;  %287 = vrot.lane.b32.xlu0 %v2165_v11, %s2878_s14  ;;  %v3048_v13 = vpack.c.bf16 %v110_v10, %v109_v9  ;;  %v2161_v15 = vld [vmem:[%s3388_s3] ss:$0 sm:$0xff]  ;;  %s2879_s3 = smov 96   ;;  %s2838_s0 = scalar_lea.vmem %s2148_s12, 256 }
  0x60   :  { %2509 = vmatpush3.bf16.msra.mxu1 %v3034_v8  ;;  %2506 = vmatpush3.bf16.msra.mxu0 %v2503_v5  ;;  %p2839_p12 = scmp.ne.s32.totalorder %s2148_s12, %s2838_s0  ;;  %p2843_p13 = scmp.lt.s32.totalorder %s2148_s12, %s2148_s12 }
  0x61   :  { %2510 = vmatprep.subr.bf16.mxu1 %v2875_v0  ;;  %2513 = vmatprep.subr.bf16.mxu0 %v2875_v0  ;;  %p2844_p0 = scmp.lt.s32.totalorder %s2838_s0, %s2838_s0 }
  0x63   :  { %2303 = vmatmul.mubr.msk.f32.vlgmr.msra.gmra.mrb[0].mxu0 %vm119_vm1, %v104_v12  ;;  %p2845_p1 = por %p2844_p0, %p2843_p13 }
  0x64   :  { %2512 = vmatpush3.bf16.msra.mxu1 %v3048_v13  ;;  %2515 = vmatpush3.bf16.msra.mxu0 %v3034_v8 }
  0x65   :  { %2516 = vmatprep.subr.bf16.mxu0 %v2875_v0  ;;  %2324 = vmatprep.mubr.msk.f32.mxu0 %vm2876_vm0, %v2877_v1  ;;  %p2846_p2 = pnand %p2845_p1, %p2839_p12 }
  0x66   :  { %2519 = vmatprep.subr.bf16.mxu1 %v2875_v0 }
  0x67   :  { %2314 = vmatmul.mubr.f32.vlgmr.msra.gmra.mrb[0].mxu1 %v2877_v1 }
  0x68   :  { %2518 = vmatpush3.bf16.msra.mxu0 %v3048_v13  ;;  %2521 = vmatpush3.bf16.msra.mxu1 %v3034_v8 }
  0x69   :  { %2522 = vmatprep.subr.bf16.mxu1 %v2875_v0  ;;  %2335 = vmatprep.mubr.msk.f32.mxu1 %vm2876_vm0, %v2877_v1 }
  0x6a   :  { %2525 = vmatprep.subr.bf16.mxu0 %v2875_v0 }
  0x6c   :  { %2524 = vmatpush3.bf16.msra.mxu1 %v3048_v13 }
  0x6d   :  { %2531 = vmatprep.subr.bf16.mxu1 %v2875_v0 }
  0xd1   :  { %v3073_v18 = vpop.permute.xlu0 %287 }
 0x136   :  { %v2304_v14 = vpop.f32.mrb[0].mxu0 }
 0x137   :  { %v3071_v16 = vadd.f32 %v2304_v14, %v2161_v15  ;;  %v192_v17 = vpop.f32.mrb[1].mxu0 }
 0x138   :  { %v3077_v22 = vadd.f32 %v2161_v15, %v192_v17 }
 0x13a   :  { %v271_v19 = vpop.f32.mrb[0].mxu1 }
 0x13b   :  { %v290_v20 = vadd.f32 %v3073_v18, %v271_v19  ;;  %v2315_v21 = vpop.f32.mrb[1].mxu1  ;;  %v275_v23 = vadd.f32 %v271_v19, %v3077_v22 }
 0x13d   :  { %292 = vrot.lane.b32.xlu0 %v290_v20, %s2878_s14  ;;  %v2164_v24 = vmul.f32 -1.442695, %v275_v23 }
 0x13f   :  { %2632 = vpow2.f32 %v2164_v24 }
 0x149   :  { %v2633_v25 = vpop.eup %2632 }
 0x14a   :  { %v279_v26 = vadd.f32 1.0, %v2633_v25 }
 0x14c   :  { %2634 = vrcp.f32 %v279_v26 }
 0x156   :  { %v2635_v27 = vpop.eup %2634 }
 0x157   :  { %v302_v33 = vsub.f32 1.0, %v2635_v27  ;;  %v308_v35 = vmul.f32 0.0, %v2635_v27 }
 0x1af   :  { %v293_v28 = vpop.permute.xlu0 %292 }
 0x1b0   :  { %v295_v29 = vmul.f32 %v2635_v27, %v293_v28 }
 0x1b2   :  { %297 = vrot.lane.b32.xlu1 %v295_v29, %s2878_s14 }
 0x224   :  { %v298_v30 = vpop.permute.xlu1 %297 }
 0x225   :  { %v300_v31 = vadd.f32 %v298_v30, %v3077_v22 }
 0x227   :  { %2636 = vtanh.f32 %v300_v31 }
 0x231   :  { %v2637_v32 = vpop.eup %2636 }
 0x232   :  { %304 = vrot.lane.b32.xlu1 %v2637_v32, %s2879_s3 }
 0x2a4   :  { %v305_v34 = vpop.permute.xlu1 %304 }
 0x2a5   :  { %v307_v36 = vmul.f32 %v305_v34, %v302_v33 }
 0x2a7   :  { %v3083_v37 = vadd.f32 %v308_v35, %v307_v36 }
 0x2a9   :  { %311 = vrot.lane.b32.xlu0 %v3083_v37, %s2879_s3  ;;  %v414_v55 = vrot.slane %v3083_v37, 6 }
 0x31b   :  { %v312_v38 = vpop.permute.xlu0 %311 }
 0x31c   :  { %2325 = vmatmul.mubr.msk.f32.vlgmr.msra.gmra.mrb[2].mxu0 %vm201_vm2, %v312_v38 }
 0x31d   :  { %2527 = vmatpush3.bf16.msra.mxu0 %v3034_v8  ;;  %2346 = vmatprep.mubr.msk.f32.mxu0 %vm2876_vm0, %v2877_v1 }
 0x31e   :  { %2528 = vmatprep.subr.bf16.mxu0 %v2875_v0 }
 0x321   :  { %2530 = vmatpush3.bf16.msra.mxu0 %v3048_v13 }
 0x322   :  { %2537 = vmatprep.subr.bf16.mxu0 %v2875_v0 }
 0x3ef   :  { %v381_v39 = vpop.f32.mrb[2].mxu0 }
 0x3f0   :  { %v395_v40 = vadd.f32 %v381_v39, %v3073_v18  ;;  %v2326_v41 = vpop.f32.mrb[3].mxu0  ;;  %v386_v43 = vrot.slane %v381_v39, 6 }
 0x3f2   :  { %v397_v42 = vrot.slane %v395_v40, 6  ;;  %v388_v44 = vadd.f32 %v386_v43, %v3077_v22 }
 0x3f4   :  { %398 = vrot.lane.b32.xlu1 %v397_v42, %s2878_s14  ;;  %v2167_v45 = vmul.f32 -1.442695, %v388_v44 }
 0x3f6   :  { %2638 = vpow2.f32 %v2167_v45 }
 0x400   :  { %v2639_v46 = vpop.eup %2638 }
 0x401   :  { %v392_v47 = vadd.f32 1.0, %v2639_v46 }
 0x403   :  { %2640 = vrcp.f32 %v392_v47 }
 0x40d   :  { %v2641_v48 = vpop.eup %2640 }
 0x40e   :  { %v408_v54 = vsub.f32 1.0, %v2641_v48  ;;  %v416_v58 = vmul.f32 %v2641_v48, %v414_v55 }
 0x466   :  { %v399_v49 = vpop.permute.xlu1 %398 }
 0x467   :  { %v401_v50 = vmul.f32 %v2641_v48, %v399_v49 }
 0x469   :  { %403 = vrot.lane.b32.xlu0 %v401_v50, %s2878_s14 }
 0x4db   :  { %v404_v51 = vpop.permute.xlu0 %403 }
 0x4dc   :  { %v406_v52 = vadd.f32 %v404_v51, %v3077_v22 }
 0x4de   :  { %2642 = vtanh.f32 %v406_v52 }
 0x4e8   :  { %v2643_v53 = vpop.eup %2642 }
 0x4e9   :  { %410 = vrot.lane.b32.xlu1 %v2643_v53, %s2879_s3 }
 0x55b   :  { %v411_v56 = vpop.permute.xlu1 %410 }
 0x55c   :  { %v413_v57 = vmul.f32 %v411_v56, %v408_v54 }
 0x55e   :  { %v417_v59 = vadd.f32 %v416_v58, %v413_v57 }
 0x560   :  { %v419_v60 = vrot.slane %v417_v59, 2  ;;  %v523_v20 = vrot.slane %v417_v59, 6  ;;  %v1067_v26 = vsel %vm1066_vm3, %v3083_v37, %v417_v59 }
 0x562   :  { %420 = vrot.lane.b32.xlu0 %v419_v60, %s2879_s3 }
 0x5d4   :  { %v421_v61 = vpop.permute.xlu0 %420 }
 0x5d5   :  { %2336 = vmatmul.mubr.msk.f32.vlgmr.msra.gmra.mrb[2].mxu1 %vm201_vm2, %v421_v61 }
 0x5d6   :  { %2533 = vmatpush3.bf16.msra.mxu1 %v3034_v8  ;;  %2357 = vmatprep.mubr.msk.f32.mxu1 %vm2876_vm0, %v2877_v1 }
 0x5d7   :  { %2534 = vmatprep.subr.bf16.mxu1 %v2875_v0 }
 0x5da   :  { %2536 = vmatpush3.bf16.msra.mxu1 %v3048_v13 }
 0x5db   :  { %2543 = vmatprep.subr.bf16.mxu1 %v2875_v0 }
 0x6a8   :  { %v490_v62 = vpop.f32.mrb[2].mxu1 }
 0x6a9   :  { %v504_v63 = vadd.f32 %v490_v62, %v3073_v18  ;;  %v2337_v2 = vpop.f32.mrb[3].mxu1  ;;  %v495_v4 = vrot.slane %v490_v62, 4 }
 0x6ab   :  { %v506_v3 = vrot.slane %v504_v63, 4  ;;  %v497_v5 = vadd.f32 %v495_v4, %v3077_v22 }
 0x6ad   :  { %507 = vrot.lane.b32.xlu1 %v506_v3, %s2878_s14  ;;  %v2169_v6 = vmul.f32 -1.442695, %v497_v5 }
 0x6af   :  { %2644 = vpow2.f32 %v2169_v6 }
 0x6b9   :  { %v2645_v7 = vpop.eup %2644 }
 0x6ba   :  { %v501_v9 = vadd.f32 1.0, %v2645_v7 }
 0x6bc   :  { %2646 = vrcp.f32 %v501_v9 }
 0x6c6   :  { %v2647_v10 = vpop.eup %2646 }
 0x6c7   :  { %v517_v19 = vsub.f32 1.0, %v2647_v10  ;;  %v525_v23 = vmul.f32 %v2647_v10, %v523_v20 }
 0x71f   :  { %v508_v11 = vpop.permute.xlu1 %507 }
 0x720   :  { %v510_v12 = vmul.f32 %v2647_v10, %v508_v11 }
 0x722   :  { %512 = vrot.lane.b32.xlu0 %v510_v12, %s2878_s14 }
 0x794   :  { %v513_v14 = vpop.permute.xlu0 %512 }
 0x795   :  { %v515_v15 = vadd.f32 %v513_v14, %v3077_v22 }
 0x797   :  { %2648 = vtanh.f32 %v515_v15 }
 0x7a1   :  { %v2649_v17 = vpop.eup %2648 }
 0x7a2   :  { %519 = vrot.lane.b32.xlu1 %v2649_v17, %s2879_s3 }
 0x814   :  { %v520_v21 = vpop.permute.xlu1 %519 }
 0x815   :  { %v522_v24 = vmul.f32 %v520_v21, %v517_v19 }
 0x817   :  { %v526_v25 = vadd.f32 %v525_v23, %v522_v24 }
 0x819   :  { %v528_v27 = vrot.slane %v526_v25, 4  ;;  %v1069_v28 = vsel %vm1068_vm4, %v1067_v26, %v526_v25  ;;  %v632_v46 = vrot.slane %v526_v25, 6 }
 0x81b   :  { %529 = vrot.lane.b32.xlu0 %v528_v27, %s2879_s3 }
 0x88d   :  { %v530_v29 = vpop.permute.xlu0 %529 }
 0x88e   :  { %2347 = vmatmul.mubr.msk.f32.vlgmr.msra.gmra.mrb[4].mxu0 %vm201_vm2, %v530_v29 }
 0x88f   :  { %2539 = vmatpush3.bf16.msra.mxu0 %v3034_v8  ;;  %2368 = vmatprep.mubr.msk.f32.mxu0 %vm2876_vm0, %v2877_v1 }
 0x890   :  { %2540 = vmatprep.subr.bf16.mxu0 %v2875_v0 }
 0x893   :  { %2542 = vmatpush3.bf16.msra.mxu0 %v3048_v13 }
 0x894   :  { %2549 = vmatprep.subr.bf16.mxu0 %v2875_v0 }
 0x961   :  { %v599_v30 = vpop.f32.mrb[4].mxu0 }
 0x962   :  { %v613_v31 = vadd.f32 %v599_v30, %v3073_v18  ;;  %v2348_v32 = vpop.f32.mrb[5].mxu0  ;;  %v604_v34 = vrot.slane %v599_v30, 2 }
 0x964   :  { %v615_v33 = vrot.slane %v613_v31, 2  ;;  %v606_v35 = vadd.f32 %v604_v34, %v3077_v22 }
 0x966   :  { %616 = vrot.lane.b32.xlu1 %v615_v33, %s2878_s14  ;;  %v2171_v36 = vmul.f32 -1.442695, %v606_v35 }
 0x968   :  { %2650 = vpow2.f32 %v2171_v36 }
 0x972   :  { %v2651_v37 = vpop.eup %2650 }
 0x973   :  { %v610_v38 = vadd.f32 1.0, %v2651_v37 }
 0x975   :  { %2652 = vrcp.f32 %v610_v38 }
 0x97f   :  { %v2653_v39 = vpop.eup %2652 }
 0x980   :  { %v626_v45 = vsub.f32 1.0, %v2653_v39  ;;  %v634_v48 = vmul.f32 %v2653_v39, %v632_v46 }
 0x9d8   :  { %v617_v40 = vpop.permute.xlu1 %616 }
 0x9d9   :  { %v619_v41 = vmul.f32 %v2653_v39, %v617_v40 }
 0x9db   :  { %621 = vrot.lane.b32.xlu0 %v619_v41, %s2878_s14 }
 0xa4d   :  { %v622_v42 = vpop.permute.xlu0 %621 }
 0xa4e   :  { %v624_v43 = vadd.f32 %v622_v42, %v3077_v22 }
 0xa50   :  { %2654 = vtanh.f32 %v624_v43 }
 0xa5a   :  { %v2655_v44 = vpop.eup %2654 }
 0xa5b   :  { %628 = vrot.lane.b32.xlu1 %v2655_v44, %s2879_s3 }
 0xacd   :  { %v629_v47 = vpop.permute.xlu1 %628 }
 0xace   :  { %v631_v49 = vmul.f32 %v629_v47, %v626_v45 }
 0xad0   :  { %v635_v50 = vadd.f32 %v634_v48, %v631_v49 }
 0xad2   :  { %v637_v51 = vrot.slane %v635_v50, 6  ;;  %v3133_v52 = vsel %vm1070_vm5, %v1069_v28, %v635_v50 }
 0xad4   :  { %638 = vrot.lane.b32.xlu0 %v637_v51, %s2879_s3 }
 0xb46   :  { %v639_v53 = vpop.permute.xlu0 %638 }
 0xb47   :  { %2358 = vmatmul.mubr.msk.f32.vlgmr.msra.gmra.mrb[4].mxu1 %vm201_vm2, %v639_v53 }
 0xb48   :  { %2545 = vmatpush3.bf16.msra.mxu1 %v3034_v8  ;;  %2379 = vmatprep.mubr.msk.f32.mxu1 %vm2876_vm0, %v2877_v1 }
 0xb49   :  { %2546 = vmatprep.subr.bf16.mxu1 %v2875_v0 }
 0xb4c   :  { %2548 = vmatpush3.bf16.msra.mxu1 %v3048_v13 }
 0xc1a   :  { %v708_v22 = vpop.f32.mrb[4].mxu1 }
 0xc1b   :  { %v719_v54 = vadd.f32 %v708_v22, %v3073_v18  ;;  %v2359_v55 = vpop.f32.mrb[5].mxu1  ;;  %v712_v56 = vadd.f32 %v708_v22, %v3071_v16 }
 0xc1d   :  { %721 = vrot.lane.b32.xlu1 %v719_v54, %s2878_s14  ;;  %v2173_v57 = vmul.f32 -1.442695, %v712_v56 }
 0xc1f   :  { %2656 = vpow2.f32 %v2173_v57 }
 0xc29   :  { %v2657_v58 = vpop.eup %2656 }
 0xc2a   :  { %v716_v59 = vadd.f32 1.0, %v2657_v58 }
 0xc2c   :  { %2658 = vrcp.f32 %v716_v59 }
 0xc36   :  { %v2659_v60 = vpop.eup %2658 }
 0xc37   :  { %v731_v4 = vsub.f32 1.0, %v2659_v60  ;;  %v738_v6 = vmul.f32 %v2659_v60, %v637_v51 }
 0xc8f   :  { %v722_v61 = vpop.permute.xlu1 %721 }
 0xc90   :  { %v724_v62 = vmul.f32 %v2659_v60, %v722_v61 }
 0xc92   :  { %726 = vrot.lane.b32.xlu0 %v724_v62, %s2878_s14 }
 0xd04   :  { %v727_v63 = vpop.permute.xlu0 %726 }
 0xd05   :  { %v729_v2 = vadd.f32 %v727_v63, %v3071_v16 }
 0xd07   :  { %2660 = vtanh.f32 %v729_v2 }
 0xd11   :  { %v2661_v3 = vpop.eup %2660 }
 0xd12   :  { %733 = vrot.lane.b32.xlu1 %v2661_v3, %s2879_s3 }
 0xd84   :  { %v734_v5 = vpop.permute.xlu1 %733 }
 0xd85   :  { %v736_v7 = vmul.f32 %v734_v5, %v731_v4 }
 0xd87   :  { %v3148_v9 = vadd.f32 %v738_v6, %v736_v7 }
 0xd89   :  { %741 = vrot.lane.b32.xlu0 %v3148_v9, %s2879_s3  ;;  %v844_v29 = vrot.slane %v3148_v9, 6 }
 0xdfb   :  { %v742_v10 = vpop.permute.xlu0 %741 }
 0xdfc   :  { %2369 = vmatmul.mubr.msk.f32.vlgmr.msra.gmra.mrb[6].mxu0 %vm201_vm2, %v742_v10 }
 0xdfd   :  { %2551 = vmatpush3.bf16.msra.mxu0 %v3034_v8  ;;  %2390 = vmatprep.mubr.msk.f32.mxu0 %vm2876_vm0, %v2877_v1 }
 0xdfe   :  { %2552 = vmatprep.subr.bf16.mxu0 %v2875_v0 }
 0xe01   :  { %2554 = vmatpush3.bf16.msra.mxu0 %v3048_v13 }
 0xe02   :  { %2563 = vmatprep.subr.bf16.mxu0 %v2875_v0 }
 0xecf   :  { %v811_v11 = vpop.f32.mrb[6].mxu0 }
 0xed0   :  { %v825_v12 = vadd.f32 %v811_v11, %v3073_v18  ;;  %v2370_v14 = vpop.f32.mrb[7].mxu0  ;;  %v816_v17 = vrot.slane %v811_v11, 6 }
 0xed2   :  { %v827_v15 = vrot.slane %v825_v12, 6  ;;  %v818_v19 = vadd.f32 %v816_v17, %v3071_v16  ;;  %v1080_v17 = vld [vmem:[#allocation7 + $0x8] sm:$0xff] }
 0xed4   :  { %828 = vrot.lane.b32.xlu1 %v827_v15, %s2878_s14  ;;  %v2175_v8 = vmul.f32 -1.442695, %v818_v19  ;;  %v1079_v15 = vld [vmem:[#allocation7] sm:$0xff]  ;;  %v1081_v19 = vld [vmem:[#allocation7 + $0x10] sm:$0xff] }
 0xed6   :  { %2662 = vpow2.f32 %v2175_v8  ;;  %v3195_v8 = vpack.c.bf16 %v1080_v17, %v1079_v15 }
 0xee0   :  { %v2663_v20 = vpop.eup %2662 }
 0xee1   :  { %v822_v21 = vadd.f32 1.0, %v2663_v20  ;;  %v1082_v20 = vld [vmem:[#allocation7 + $0x18] sm:$0xff] }
 0xee3   :  { %2664 = vrcp.f32 %v822_v21  ;;  %v1075_v21 = vld [vmem:[%s3390_s5] sm:$0xff] }
 0xeed   :  { %v2665_v23 = vpop.eup %2664 }
 0xeee   :  { %v838_v28 = vsub.f32 1.0, %v2665_v23  ;;  %v846_v32 = vmul.f32 %v2665_v23, %v844_v29 }
 0xf46   :  { %v829_v24 = vpop.permute.xlu1 %828 }
 0xf47   :  { %v831_v13 = vmul.f32 %v2665_v23, %v829_v24  ;;  %v1078_v24 = vld [vmem:[%s3390_s5 + $0x18] sm:$0xff] }
 0xf49   :  { %833 = vrot.lane.b32.xlu0 %v831_v13, %s2878_s14  ;;  %v3210_v13 = vpack.c.bf16 %v1082_v20, %v1081_v19 }
 0xfbb   :  { %v834_v25 = vpop.permute.xlu0 %833 }
 0xfbc   :  { %v836_v26 = vadd.f32 %v834_v25, %v3071_v16 }
 0xfbe   :  { %2666 = vtanh.f32 %v836_v26 }
 0xfc8   :  { %v2667_v27 = vpop.eup %2666 }
 0xfc9   :  { %840 = vrot.lane.b32.xlu1 %v2667_v27, %s2879_s3  ;;  %v2184_v27 = vld [vmem:[#allocation10] ss:$0 sm:$0xff] }
0x103b   :  { %v841_v30 = vpop.permute.xlu1 %840 }
0x103c   :  { %v843_v31 = vmul.f32 %v841_v30, %v838_v28 }
0x103e   :  { %v847_v33 = vadd.f32 %v846_v32, %v843_v31 }
0x1040   :  { %v849_v34 = vrot.slane %v847_v33, 2  ;;  %v953_v53 = vrot.slane %v847_v33, 6  ;;  %v1072_v57 = vsel %vm1066_vm3, %v3148_v9, %v847_v33 }
0x1042   :  { %850 = vrot.lane.b32.xlu0 %v849_v34, %s2879_s3 }
0x10b4   :  { %v851_v35 = vpop.permute.xlu0 %850 }
0x10b5   :  { %2380 = vmatmul.mubr.msk.f32.vlgmr.msra.gmra.mrb[6].mxu1 %vm201_vm2, %v851_v35 }
0x1188   :  { %v920_v36 = vpop.f32.mrb[6].mxu1 }
0x1189   :  { %v934_v37 = vadd.f32 %v920_v36, %v3073_v18  ;;  %v2381_v38 = vpop.f32.mrb[7].mxu1  ;;  %v925_v40 = vrot.slane %v920_v36, 4 }
0x118b   :  { %v936_v39 = vrot.slane %v934_v37, 4  ;;  %v927_v41 = vadd.f32 %v925_v40, %v3071_v16  ;;  %v2180_v40 = vld [vmem:[#allocation8] ss:$0 sm:$0xff] }
0x118d   :  { %937 = vrot.lane.b32.xlu1 %v936_v39, %s2878_s14  ;;  %v2177_v42 = vmul.f32 -1.442695, %v927_v41 }
0x118f   :  { %2668 = vpow2.f32 %v2177_v42 }
0x1199   :  { %v2669_v43 = vpop.eup %2668 }
0x119a   :  { %v931_v44 = vadd.f32 1.0, %v2669_v43 }
0x119c   :  { %2670 = vrcp.f32 %v931_v44 }
0x11a6   :  { %v2671_v45 = vpop.eup %2670 }
0x11a7   :  { %v947_v51 = vsub.f32 1.0, %v2671_v45  ;;  %v955_v54 = vmul.f32 %v2671_v45, %v953_v53 }
0x11ff   :  { %v938_v46 = vpop.permute.xlu1 %937 }
0x1200   :  { %v940_v47 = vmul.f32 %v2671_v45, %v938_v46 }
0x1202   :  { %942 = vrot.lane.b32.xlu0 %v940_v47, %s2878_s14 }
0x1274   :  { %v943_v48 = vpop.permute.xlu0 %942 }
0x1275   :  { %v945_v49 = vadd.f32 %v943_v48, %v3071_v16 }
0x1277   :  { %2672 = vtanh.f32 %v945_v49 }
0x1281   :  { %v2673_v50 = vpop.eup %2672 }
0x1282   :  { %949 = vrot.lane.b32.xlu1 %v2673_v50, %s2879_s3 }
0x12f4   :  { %v950_v22 = vpop.permute.xlu1 %949 }
0x12f5   :  { %v952_v55 = vmul.f32 %v950_v22, %v947_v51 }
0x12f7   :  { %v3174_v56 = vadd.f32 %v955_v54, %v952_v55 }
0x12f9   :  { %v958_v58 = vrot.slane %v3174_v56, 4  ;;  %v3181_v59 = vsel %vm1068_vm4, %v1072_v57, %v3174_v56  ;;  %v1062_v29 = vrot.slane %v3174_v56, 6 }
0x12fb   :  { %959 = vrot.lane.b32.xlu0 %v958_v58, %s2879_s3 }
0x136d   :  { %v960_v60 = vpop.permute.xlu0 %959 }
0x136e   :  { %2391 = vmatmul.mubr.msk.f32.vlgmr.msra.gmra.mrb[8].mxu0 %vm201_vm2, %v960_v60 }
0x136f   :  { %2412 = vmatprep.mubr.msk.f32.mxu0 %vm2876_vm0, %v2877_v1  ;;  %2565 = vmatpush3.bf16.msra.mxu0 %v3195_v8 }
0x1370   :  { %2566 = vmatprep.subr.bf16.mxu0 %v2875_v0 }
0x1373   :  { %2568 = vmatpush3.bf16.msra.mxu0 %v3210_v13 }
0x1374   :  { %2575 = vmatprep.subr.bf16.mxu0 %v2875_v0 }
0x1376   :  { %2413 = vmatmul.mubr.f32.vlgmr.msra.gmra.mrb[10].mxu0 %v2877_v1 }
0x1377   :  { %2577 = vmatpush3.bf16.msra.mxu0 %v3195_v8  ;;  %2434 = vmatprep.mubr.msk.f32.mxu0 %vm2876_vm0, %v2877_v1 }
0x1378   :  { %2578 = vmatprep.subr.bf16.mxu0 %v2875_v0 }
0x137b   :  { %2580 = vmatpush3.bf16.msra.mxu0 %v3210_v13 }
0x137c   :  { %2587 = vmatprep.subr.bf16.mxu0 %v2875_v0 }
0x1441   :  { %v1029_v61 = vpop.f32.mrb[8].mxu0 }
0x1442   :  { %v1043_v62 = vadd.f32 %v1029_v61, %v3073_v18  ;;  %v2392_v63 = vpop.f32.mrb[9].mxu0  ;;  %v1034_v3 = vrot.slane %v1029_v61, 2 }
0x1444   :  { %v1045_v2 = vrot.slane %v1043_v62, 2  ;;  %v1036_v4 = vadd.f32 %v1034_v3, %v3071_v16 }
0x1446   :  { %1046 = vrot.lane.b32.xlu1 %v1045_v2, %s2878_s14  ;;  %v2179_v5 = vmul.f32 -1.442695, %v1036_v4 }
0x1448   :  { %2674 = vpow2.f32 %v2179_v5 }
0x1449   :  { %v1242_v35 = vpop.f32.mrb[10].mxu0 }
0x144a   :  { %v2414_v36 = vpop.f32.mrb[11].mxu0 }
0x1452   :  { %v2675_v6 = vpop.eup %2674 }
0x1453   :  { %v1040_v7 = vadd.f32 1.0, %v2675_v6 }
0x1455   :  { %2676 = vrcp.f32 %v1040_v7 }
0x145f   :  { %v2677_v9 = vpop.eup %2676 }
0x1460   :  { %v1056_v28 = vsub.f32 1.0, %v2677_v9  ;;  %v1064_v31 = vmul.f32 %v2677_v9, %v1062_v29 }
0x14b8   :  { %v1047_v10 = vpop.permute.xlu1 %1046 }
0x14b9   :  { %v1049_v11 = vmul.f32 %v2677_v9, %v1047_v10 }
0x14bb   :  { %1051 = vrot.lane.b32.xlu0 %v1049_v11, %s2878_s14 }
0x14bf   :  { %1093 = vrot.lane.b32.xlu0 %v3133_v52, %s2879_s3  ;;  %v1076_v52 = vld [vmem:[%s3390_s5 + $0x8] sm:$0xff] }
0x14c0   :  { %v2555_v23 = vpack.c.bf16 %v1076_v52, %v1075_v21 }
0x14c2   :  { %2556 = vmatprep.subr.bf16.mxu1 %v2555_v23 }
0x14c3   :  { %2558 = vmatpush3.bf16.msra.mxu1 %v2555_v23  ;;  %1258 = vrot.lane.b32.xlu0 %v2184_v27, %s2878_s14 }
0x152d   :  { %v1052_v18 = vpop.permute.xlu0 %1051 }
0x152e   :  { %v1054_v12 = vadd.f32 %v1052_v18, %v3071_v16  ;;  %v1077_v16 = vld [vmem:[%s3390_s5 + $0x10] sm:$0xff] }
0x152f   :  { %v2559_v25 = vpack.c.bf16 %v1078_v24, %v1077_v16 }
0x1530   :  { %2678 = vtanh.f32 %v1054_v12 }
0x1531   :  { %v1094_v14 = vpop.permute.xlu0 %1093  ;;  %2560 = vmatprep.subr.bf16.mxu1 %v2559_v25 }
0x1532   :  { %2401 = vmatprep.mubr.msk.f32.mxu1 %vm201_vm2, %v1094_v14  ;;  %2562 = vmatpush3.bf16.msra.mxu1 %v2559_v25 }
0x1533   :  { %2569 = vmatprep.subr.bf16.mxu1 %v2875_v0 }
0x1535   :  { %v3229_v37 = vpop.permute.xlu0 %1258 }
0x1536   :  { %v1261_v38 = vadd.f32 %v3229_v37, %v1242_v35 }
0x153a   :  { %v2679_v26 = vpop.eup %2678 }
0x153b   :  { %1058 = vrot.lane.b32.xlu1 %v2679_v26, %s2879_s3 }
0x15ad   :  { %v1059_v30 = vpop.permute.xlu1 %1058 }
0x15ae   :  { %v1061_v32 = vmul.f32 %v1059_v30, %v1056_v28 }
0x15b0   :  { %v1065_v33 = vadd.f32 %v1064_v31, %v1061_v32 }
0x15b2   :  { %v1074_v34 = vsel %vm1070_vm5, %v3181_v59, %v1065_v33 }
0x15b3   :  { %1095 = vrot.lane.b32.xlu1 %v1074_v34, %s2879_s3 }
0x15b7   :  { %1263 = vrot.lane.b32.xlu1 %v1261_v38, %s2878_s14 }
0x1625   :  { %v1096_v39 = vpop.permute.xlu1 %1095 }
0x1626   :  { %2402 = vmatmul.mubr.msk.f32.vlgmr.msra.gmra.mrb[8].mxu1 %vm201_vm2, %v1096_v39 }
0x1627   :  { %2571 = vmatpush3.bf16.msra.mxu1 %v3195_v8  ;;  %2423 = vmatprep.mubr.msk.f32.mxu1 %vm2876_vm0, %v2877_v1 }
0x1628   :  { %2572 = vmatprep.subr.bf16.mxu1 %v2875_v0 }
0x1629   :  { %v1264_v49 = vpop.permute.xlu1 %1263 }
0x162b   :  { %2574 = vmatpush3.bf16.msra.mxu1 %v3210_v13 }
0x162c   :  { %2581 = vmatprep.subr.bf16.mxu1 %v2875_v0 }
0x16f9   :  { %v2403_v41 = vpop.f32.mrb[8].mxu1 }
0x16fa   :  { %v3240_v42 = vadd.f32 %v2403_v41, %v2180_v40  ;;  %v1167_v43 = vpop.f32.mrb[9].mxu1 }
0x16fb   :  { %v3242_v44 = vadd.f32 %v2180_v40, %v1167_v43 }
0x16fd   :  { %v1246_v45 = vadd.f32 %v1242_v35, %v3242_v44 }
0x16ff   :  { %v2183_v46 = vmul.f32 -1.442695, %v1246_v45 }
0x1701   :  { %2680 = vpow2.f32 %v2183_v46 }
0x170b   :  { %v2681_v47 = vpop.eup %2680 }
0x170c   :  { %v1250_v48 = vadd.f32 1.0, %v2681_v47 }
0x170e   :  { %2682 = vrcp.f32 %v1250_v48 }
0x1718   :  { %v2683_v50 = vpop.eup %2682 }
0x1719   :  { %v1266_v51 = vmul.f32 %v2683_v50, %v1264_v49  ;;  %v1273_v55 = vsub.f32 1.0, %v2683_v50  ;;  %v1279_v57 = vmul.f32 0.0, %v2683_v50 }
0x171b   :  { %1268 = vrot.lane.b32.xlu0 %v1266_v51, %s2878_s14 }
0x178d   :  { %v1269_v53 = vpop.permute.xlu0 %1268 }
0x178e   :  { %v1271_v22 = vadd.f32 %v1269_v53, %v3242_v44 }
0x1790   :  { %2684 = vtanh.f32 %v1271_v22 }
0x179a   :  { %v2685_v54 = vpop.eup %2684 }
0x179b   :  { %1275 = vrot.lane.b32.xlu1 %v2685_v54, %s2879_s3 }
0x180d   :  { %v1276_v56 = vpop.permute.xlu1 %1275 }
0x180e   :  { %v1278_v58 = vmul.f32 %v1276_v56, %v1273_v55 }
0x1810   :  { %v3248_v59 = vadd.f32 %v1279_v57, %v1278_v58 }
0x1812   :  { %1282 = vrot.lane.b32.xlu0 %v3248_v59, %s2879_s3  ;;  %v1385_v17 = vrot.slane %v3248_v59, 6 }
0x1884   :  { %v1283_v60 = vpop.permute.xlu0 %1282 }
0x1885   :  { %2424 = vmatmul.mubr.msk.f32.vlgmr.msra.gmra.mrb[10].mxu1 %vm201_vm2, %v1283_v60 }
0x1886   :  { %2583 = vmatpush3.bf16.msra.mxu1 %v3195_v8  ;;  %2445 = vmatprep.mubr.msk.f32.mxu1 %vm2876_vm0, %v2877_v1 }
0x1887   :  { %2584 = vmatprep.subr.bf16.mxu1 %v2875_v0 }
0x188a   :  { %2586 = vmatpush3.bf16.msra.mxu1 %v3210_v13 }
0x188b   :  { %2593 = vmatprep.subr.bf16.mxu1 %v2875_v0 }
0x1958   :  { %v1352_v61 = vpop.f32.mrb[10].mxu1 }
0x1959   :  { %v1366_v62 = vadd.f32 %v1352_v61, %v3229_v37  ;;  %v2425_v63 = vpop.f32.mrb[11].mxu1  ;;  %v1357_v3 = vrot.slane %v1352_v61, 6 }
0x195b   :  { %v1368_v2 = vrot.slane %v1366_v62, 6  ;;  %v1359_v4 = vadd.f32 %v1357_v3, %v3242_v44 }
0x195d   :  { %1369 = vrot.lane.b32.xlu1 %v1368_v2, %s2878_s14  ;;  %v2186_v5 = vmul.f32 -1.442695, %v1359_v4 }
0x195f   :  { %2686 = vpow2.f32 %v2186_v5 }
0x1969   :  { %v2687_v6 = vpop.eup %2686 }
0x196a   :  { %v1363_v7 = vadd.f32 1.0, %v2687_v6 }
0x196c   :  { %2688 = vrcp.f32 %v1363_v7 }
0x1976   :  { %v2689_v9 = vpop.eup %2688 }
0x1977   :  { %v1379_v15 = vsub.f32 1.0, %v2689_v9  ;;  %v1387_v21 = vmul.f32 %v2689_v9, %v1385_v17 }
0x19cf   :  { %v1370_v10 = vpop.permute.xlu1 %1369 }
0x19d0   :  { %v1372_v11 = vmul.f32 %v2689_v9, %v1370_v10 }
0x19d2   :  { %1374 = vrot.lane.b32.xlu0 %v1372_v11, %s2878_s14 }
0x1a44   :  { %v1375_v18 = vpop.permute.xlu0 %1374 }
0x1a45   :  { %v1377_v12 = vadd.f32 %v1375_v18, %v3242_v44 }
0x1a47   :  { %2690 = vtanh.f32 %v1377_v12 }
0x1a51   :  { %v2691_v14 = vpop.eup %2690 }
0x1a52   :  { %1381 = vrot.lane.b32.xlu1 %v2691_v14, %s2879_s3 }
0x1ac4   :  { %v1382_v19 = vpop.permute.xlu1 %1381 }
0x1ac5   :  { %v1384_v20 = vmul.f32 %v1382_v19, %v1379_v15 }
0x1ac7   :  { %v1388_v52 = vadd.f32 %v1387_v21, %v1384_v20 }
0x1ac9   :  { %v1390_v23 = vrot.slane %v1388_v52, 2  ;;  %v1494_v41 = vrot.slane %v1388_v52, 6  ;;  %v2037_v48 = vsel %vm1066_vm3, %v3248_v59, %v1388_v52 }
0x1acb   :  { %1391 = vrot.lane.b32.xlu0 %v1390_v23, %s2879_s3 }
0x1b3d   :  { %v1392_v16 = vpop.permute.xlu0 %1391 }
0x1b3e   :  { %2435 = vmatmul.mubr.msk.f32.vlgmr.msra.gmra.mrb[12].mxu0 %vm201_vm2, %v1392_v16 }
0x1b3f   :  { %2589 = vmatpush3.bf16.msra.mxu0 %v3195_v8  ;;  %2456 = vmatprep.mubr.msk.f32.mxu0 %vm2876_vm0, %v2877_v1 }
0x1b40   :  { %2590 = vmatprep.subr.bf16.mxu0 %v2875_v0 }
0x1b43   :  { %2592 = vmatpush3.bf16.msra.mxu0 %v3210_v13 }
0x1b44   :  { %2599 = vmatprep.subr.bf16.mxu0 %v2875_v0 }
0x1c11   :  { %v1461_v24 = vpop.f32.mrb[12].mxu0 }
0x1c12   :  { %v1475_v25 = vadd.f32 %v1461_v24, %v3229_v37  ;;  %v2436_v26 = vpop.f32.mrb[13].mxu0  ;;  %v1466_v28 = vrot.slane %v1461_v24, 4 }
0x1c14   :  { %v1477_v27 = vrot.slane %v1475_v25, 4  ;;  %v1468_v29 = vadd.f32 %v1466_v28, %v3242_v44 }
0x1c16   :  { %1478 = vrot.lane.b32.xlu1 %v1477_v27, %s2878_s14  ;;  %v2188_v30 = vmul.f32 -1.442695, %v1468_v29 }
0x1c18   :  { %2692 = vpow2.f32 %v2188_v30 }
0x1c22   :  { %v2693_v31 = vpop.eup %2692 }
0x1c23   :  { %v1472_v32 = vadd.f32 1.0, %v2693_v31 }
0x1c25   :  { %2694 = vrcp.f32 %v1472_v32 }
0x1c2f   :  { %v2695_v33 = vpop.eup %2694 }
0x1c30   :  { %v1488_v40 = vsub.f32 1.0, %v2695_v33  ;;  %v1496_v45 = vmul.f32 %v2695_v33, %v1494_v41 }
0x1c88   :  { %v1479_v34 = vpop.permute.xlu1 %1478 }
0x1c89   :  { %v1481_v35 = vmul.f32 %v2695_v33, %v1479_v34 }
0x1c8b   :  { %1483 = vrot.lane.b32.xlu0 %v1481_v35, %s2878_s14 }
0x1cfd   :  { %v1484_v36 = vpop.permute.xlu0 %1483 }
0x1cfe   :  { %v1486_v38 = vadd.f32 %v1484_v36, %v3242_v44 }
0x1d00   :  { %2696 = vtanh.f32 %v1486_v38 }
0x1d0a   :  { %v2697_v39 = vpop.eup %2696 }
0x1d0b   :  { %1490 = vrot.lane.b32.xlu1 %v2697_v39, %s2879_s3 }
0x1d7d   :  { %v1491_v43 = vpop.permute.xlu1 %1490 }
0x1d7e   :  { %v1493_v46 = vmul.f32 %v1491_v43, %v1488_v40 }
0x1d80   :  { %v1497_v47 = vadd.f32 %v1496_v45, %v1493_v46 }
0x1d82   :  { %v1499_v49 = vrot.slane %v1497_v47, 4  ;;  %v2038_v50 = vsel %vm1068_vm4, %v2037_v48, %v1497_v47  ;;  %v1603_v6 = vrot.slane %v1497_v47, 6 }
0x1d84   :  { %1500 = vrot.lane.b32.xlu0 %v1499_v49, %s2879_s3 }
0x1df6   :  { %v1501_v51 = vpop.permute.xlu0 %1500 }
0x1df7   :  { %2446 = vmatmul.mubr.msk.f32.vlgmr.msra.gmra.mrb[12].mxu1 %vm201_vm2, %v1501_v51 }
0x1df8   :  { %2595 = vmatpush3.bf16.msra.mxu1 %v3195_v8  ;;  %2467 = vmatprep.mubr.msk.f32.mxu1 %vm2876_vm0, %v2877_v1 }
0x1df9   :  { %2596 = vmatprep.subr.bf16.mxu1 %v2875_v0 }
0x1dfc   :  { %2598 = vmatpush3.bf16.msra.mxu1 %v3210_v13 }
0x1dfd   :  { %2605 = vmatprep.subr.bf16.mxu1 %v2875_v0 }
0x1eca   :  { %v1570_v53 = vpop.f32.mrb[12].mxu1 }
0x1ecb   :  { %v1584_v22 = vadd.f32 %v1570_v53, %v3229_v37  ;;  %v2447_v54 = vpop.f32.mrb[13].mxu1  ;;  %v1575_v56 = vrot.slane %v1570_v53, 2 }
0x1ecd   :  { %v1586_v55 = vrot.slane %v1584_v22, 2  ;;  %v1577_v57 = vadd.f32 %v1575_v56, %v3242_v44 }
0x1ecf   :  { %1587 = vrot.lane.b32.xlu1 %v1586_v55, %s2878_s14  ;;  %v2190_v58 = vmul.f32 -1.442695, %v1577_v57 }
0x1ed1   :  { %2698 = vpow2.f32 %v2190_v58 }
0x1edb   :  { %v2699_v59 = vpop.eup %2698 }
0x1edc   :  { %v1581_v60 = vadd.f32 1.0, %v2699_v59 }
0x1ede   :  { %2700 = vrcp.f32 %v1581_v60 }
0x1ee8   :  { %v2701_v61 = vpop.eup %2700 }
0x1ee9   :  { %v1597_v5 = vsub.f32 1.0, %v2701_v61  ;;  %v1605_v9 = vmul.f32 %v2701_v61, %v1603_v6 }
0x1f41   :  { %v1588_v62 = vpop.permute.xlu1 %1587 }
0x1f42   :  { %v1590_v63 = vmul.f32 %v2701_v61, %v1588_v62 }
0x1f44   :  { %1592 = vrot.lane.b32.xlu0 %v1590_v63, %s2878_s14 }
0x1fb6   :  { %v1593_v2 = vpop.permute.xlu0 %1592 }
0x1fb7   :  { %v1595_v3 = vadd.f32 %v1593_v2, %v3242_v44 }
0x1fb9   :  { %2702 = vtanh.f32 %v1595_v3 }
0x1fc3   :  { %v2703_v4 = vpop.eup %2702 }
0x1fc4   :  { %1599 = vrot.lane.b32.xlu1 %v2703_v4, %s2879_s3 }
0x2036   :  { %v1600_v7 = vpop.permute.xlu1 %1599 }
0x2037   :  { %v1602_v10 = vmul.f32 %v1600_v7, %v1597_v5 }
0x2039   :  { %v1606_v11 = vadd.f32 %v1605_v9, %v1602_v10 }
0x203b   :  { %v1608_v18 = vrot.slane %v1606_v11, 6  ;;  %v3298_v12 = vsel %vm1070_vm5, %v2038_v50, %v1606_v11 }
0x203d   :  { %1609 = vrot.lane.b32.xlu0 %v1608_v18, %s2879_s3 }
0x20af   :  { %v1610_v14 = vpop.permute.xlu0 %1609 }
0x20b0   :  { %2457 = vmatmul.mubr.msk.f32.vlgmr.msra.gmra.mrb[14].mxu0 %vm201_vm2, %v1610_v14 }
0x20b1   :  { %2601 = vmatpush3.bf16.msra.mxu0 %v3195_v8  ;;  %2478 = vmatprep.mubr.msk.f32.mxu0 %vm2876_vm0, %v2877_v1 }
0x20b2   :  { %2602 = vmatprep.subr.bf16.mxu0 %v2875_v0 }
0x20b5   :  { %2604 = vmatpush3.bf16.msra.mxu0 %v3210_v13 }
0x2183   :  { %v1679_v44 = vpop.f32.mrb[14].mxu0 }
0x2184   :  { %v1690_v15 = vadd.f32 %v1679_v44, %v3229_v37  ;;  %v2458_v17 = vpop.f32.mrb[15].mxu0  ;;  %v1683_v19 = vadd.f32 %v1679_v44, %v3240_v42 }
0x2186   :  { %1692 = vrot.lane.b32.xlu1 %v1690_v15, %s2878_s14  ;;  %v2192_v20 = vmul.f32 -1.442695, %v1683_v19 }
0x2188   :  { %2704 = vpow2.f32 %v2192_v20 }
0x2192   :  { %v2705_v21 = vpop.eup %2704 }
0x2193   :  { %v1687_v52 = vadd.f32 1.0, %v2705_v21 }
0x2195   :  { %2706 = vrcp.f32 %v1687_v52 }
0x219f   :  { %v2707_v23 = vpop.eup %2706 }
0x21a0   :  { %v1702_v28 = vsub.f32 1.0, %v2707_v23  ;;  %v1709_v30 = vmul.f32 %v2707_v23, %v1608_v18 }
0x21f8   :  { %v1693_v16 = vpop.permute.xlu1 %1692 }
0x21f9   :  { %v1695_v24 = vmul.f32 %v2707_v23, %v1693_v16 }
0x21fb   :  { %1697 = vrot.lane.b32.xlu0 %v1695_v24, %s2878_s14 }
0x226d   :  { %v1698_v25 = vpop.permute.xlu0 %1697 }
0x226e   :  { %v1700_v26 = vadd.f32 %v1698_v25, %v3240_v42 }
0x2270   :  { %2708 = vtanh.f32 %v1700_v26 }
0x227a   :  { %v2709_v27 = vpop.eup %2708 }
0x227b   :  { %1704 = vrot.lane.b32.xlu1 %v2709_v27, %s2879_s3 }
0x22ed   :  { %v1705_v29 = vpop.permute.xlu1 %1704 }
0x22ee   :  { %v1707_v31 = vmul.f32 %v1705_v29, %v1702_v28 }
0x22f0   :  { %v3313_v32 = vadd.f32 %v1709_v30, %v1707_v31 }
0x22f2   :  { %1712 = vrot.lane.b32.xlu0 %v3313_v32, %s2879_s3  ;;  %v1815_v49 = vrot.slane %v3313_v32, 6 }
0x2364   :  { %v1713_v33 = vpop.permute.xlu0 %1712 }
0x2365   :  { %2468 = vmatmul.mubr.msk.f32.vlgmr.msra.gmra.mrb[14].mxu1 %vm201_vm2, %v1713_v33 }
0x2366   :  { %2607 = vmatpush3.bf16.msra.mxu1 %v3195_v8  ;;  %2489 = vmatprep.mubr.msk.f32.mxu1 %vm2876_vm0, %v2877_v1 }
0x2367   :  { %2608 = vmatprep.subr.bf16.mxu1 %v2875_v0 }
0x236a   :  { %2610 = vmatpush3.bf16.msra.mxu1 %v3210_v13 }
0x2438   :  { %v1782_v34 = vpop.f32.mrb[14].mxu1 }
0x2439   :  { %v1796_v35 = vadd.f32 %v1782_v34, %v3229_v37  ;;  %v2469_v36 = vpop.f32.mrb[15].mxu1  ;;  %v1787_v39 = vrot.slane %v1782_v34, 6 }
0x243a   :  { %v2044_v36 = vld [vmem:[%s3394_s9 + $0x8] sm:$0xff] }
0x243b   :  { %v1798_v38 = vrot.slane %v1796_v35, 6  ;;  %v1789_v40 = vadd.f32 %v1787_v39, %v3240_v42  ;;  %v2043_v35 = vld [vmem:[%s3394_s9] sm:$0xff] }
0x243d   :  { %1799 = vrot.lane.b32.xlu1 %v1798_v38, %s2878_s14  ;;  %v2194_v41 = vmul.f32 -1.442695, %v1789_v40  ;;  %v2045_v38 = vld [vmem:[%s3394_s9 + $0x10] sm:$0xff] }
0x243f   :  { %2710 = vpow2.f32 %v2194_v41 }
0x2449   :  { %v2711_v8 = vpop.eup %2710 }
0x244a   :  { %v1793_v43 = vadd.f32 1.0, %v2711_v8 }
0x244c   :  { %2712 = vrcp.f32 %v1793_v43 }
0x2456   :  { %v2713_v1 = vpop.eup %2712 }
0x2457   :  { %v1809_v48 = vsub.f32 1.0, %v2713_v1  ;;  %v1817_v53 = vmul.f32 %v2713_v1, %v1815_v49 }
0x24af   :  { %v1800_v45 = vpop.permute.xlu1 %1799 }
0x24b0   :  { %v1802_v0 = vmul.f32 %v2713_v1, %v1800_v45 }
0x24b2   :  { %1804 = vrot.lane.b32.xlu0 %v1802_v0, %s2878_s14 }
0x2524   :  { %v1805_v13 = vpop.permute.xlu0 %1804 }
0x2525   :  { %v1807_v46 = vadd.f32 %v1805_v13, %v3240_v42 }
0x2527   :  { %2714 = vtanh.f32 %v1807_v46 }
0x2531   :  { %v2715_v47 = vpop.eup %2714 }
0x2532   :  { %1811 = vrot.lane.b32.xlu1 %v2715_v47, %s2879_s3  ;;  %v2199_v47 = vld [vmem:[%s3395_s10] ss:$0 sm:$0xff] }
0x25a4   :  { %v1812_v50 = vpop.permute.xlu1 %1811 }
0x25a5   :  { %v1814_v51 = vmul.f32 %v1812_v50, %v1809_v48 }
0x25a7   :  { %v1818_v22 = vadd.f32 %v1817_v53, %v1814_v51 }
0x25a9   :  { %v1820_v54 = vrot.slane %v1818_v22, 2  ;;  %v1924_v11 = vrot.slane %v1818_v22, 6  ;;  %v2040_v17 = vsel %vm1066_vm3, %v3313_v32, %v1818_v22 }
0x25ab   :  { %1821 = vrot.lane.b32.xlu0 %v1820_v54, %s2879_s3 }
0x261d   :  { %v1822_v55 = vpop.permute.xlu0 %1821 }
0x261e   :  { %2479 = vmatmul.mubr.msk.f32.vlgmr.msra.gmra.mrb[16].mxu0 %vm201_vm2, %v1822_v55 }
0x26f1   :  { %v1891_v56 = vpop.f32.mrb[16].mxu0 }
0x26f2   :  { %v1905_v57 = vadd.f32 %v1891_v56, %v3229_v37  ;;  %v2480_v58 = vpop.f32.mrb[17].mxu0  ;;  %v1896_v60 = vrot.slane %v1891_v56, 4 }
0x26f4   :  { %v1907_v59 = vrot.slane %v1905_v57, 4  ;;  %v1898_v61 = vadd.f32 %v1896_v60, %v3240_v42 }
0x26f6   :  { %1908 = vrot.lane.b32.xlu1 %v1907_v59, %s2878_s14  ;;  %v2196_v62 = vmul.f32 -1.442695, %v1898_v61 }
0x26f8   :  { %2716 = vpow2.f32 %v2196_v62 }
0x2702   :  { %v2717_v63 = vpop.eup %2716 }
0x2703   :  { %v1902_v2 = vadd.f32 1.0, %v2717_v63 }
0x2705   :  { %2718 = vrcp.f32 %v1902_v2 }
0x270f   :  { %v2719_v3 = vpop.eup %2718 }
0x2710   :  { %v1918_v10 = vsub.f32 1.0, %v2719_v3  ;;  %v1926_v14 = vmul.f32 %v2719_v3, %v1924_v11 }
0x2768   :  { %v1909_v4 = vpop.permute.xlu1 %1908 }
0x2769   :  { %v1911_v5 = vmul.f32 %v2719_v3, %v1909_v4 }
0x276b   :  { %1913 = vrot.lane.b32.xlu0 %v1911_v5, %s2878_s14 }
0x27dd   :  { %v1914_v6 = vpop.permute.xlu0 %1913 }
0x27de   :  { %v1916_v7 = vadd.f32 %v1914_v6, %v3240_v42 }
0x27e0   :  { %2720 = vtanh.f32 %v1916_v7 }
0x27ea   :  { %v2721_v9 = vpop.eup %2720 }
0x27eb   :  { %1920 = vrot.lane.b32.xlu1 %v2721_v9, %s2879_s3 }
0x285d   :  { %v1921_v18 = vpop.permute.xlu1 %1920 }
0x285e   :  { %v1923_v44 = vmul.f32 %v1921_v18, %v1918_v10 }
0x2860   :  { %v1927_v15 = vadd.f32 %v1926_v14, %v1923_v44 }
0x2862   :  { %v1929_v19 = vrot.slane %v1927_v15, 4  ;;  %v2041_v20 = vsel %vm1068_vm4, %v2040_v17, %v1927_v15  ;;  %v2033_v8 = vrot.slane %v1927_v15, 6 }
0x2864   :  { %1930 = vrot.lane.b32.xlu0 %v1929_v19, %s2879_s3 }
0x28d6   :  { %v1931_v21 = vpop.permute.xlu0 %1930 }
0x28d7   :  { %2490 = vmatmul.mubr.msk.f32.vlgmr.msra.gmra.mrb[16].mxu1 %vm201_vm2, %v1931_v21 }
0x29aa   :  { %v2000_v52 = vpop.f32.mrb[16].mxu1 }
0x29ab   :  { %v2014_v23 = vadd.f32 %v2000_v52, %v3229_v37  ;;  %v2491_v16 = vpop.f32.mrb[17].mxu1  ;;  %v2005_v25 = vrot.slane %v2000_v52, 2 }
0x29ad   :  { %v2016_v24 = vrot.slane %v2014_v23, 2  ;;  %v2007_v26 = vadd.f32 %v2005_v25, %v3240_v42 }
0x29af   :  { %2017 = vrot.lane.b32.xlu1 %v2016_v24, %s2878_s14  ;;  %v2198_v27 = vmul.f32 -1.442695, %v2007_v26 }
0x29b1   :  { %2722 = vpow2.f32 %v2198_v27 }
0x29bb   :  { %v2723_v28 = vpop.eup %2722 }
0x29bc   :  { %v2011_v29 = vadd.f32 1.0, %v2723_v28 }
0x29be   :  { %2724 = vrcp.f32 %v2011_v29 }
0x29c8   :  { %v2725_v30 = vpop.eup %2724 }
0x29c9   :  { %v2027_v41 = vsub.f32 1.0, %v2725_v30  ;;  %v2035_v1 = vmul.f32 %v2725_v30, %v2033_v8 }
0x2a21   :  { %v2018_v31 = vpop.permute.xlu1 %2017 }
0x2a22   :  { %v2020_v32 = vmul.f32 %v2725_v30, %v2018_v31 }
0x2a24   :  { %2022 = vrot.lane.b32.xlu0 %v2020_v32, %s2878_s14 }
0x2a28   :  { %2056 = vrot.lane.b32.xlu0 %v3298_v12, %s2879_s3  ;;  %v2611_v12 = vpack.c.bf16 %v2044_v36, %v2043_v35 }
0x2a2a   :  { %2612 = vmatprep.subr.bf16.mxu0 %v2611_v12 }
0x2a2b   :  { %2614 = vmatpush3.bf16.msra.mxu0 %v2611_v12 }
0x2a96   :  { %v2023_v37 = vpop.permute.xlu0 %2022 }
0x2a97   :  { %v2025_v33 = vadd.f32 %v2023_v37, %v3240_v42  ;;  %v2046_v42 = vld [vmem:[%s3394_s9 + $0x18] sm:$0xff] }
0x2a98   :  { %v2615_v39 = vpack.c.bf16 %v2046_v42, %v2045_v38 }
0x2a99   :  { %2726 = vtanh.f32 %v2025_v33 }
0x2a9a   :  { %v2057_v34 = vpop.permute.xlu0 %2056  ;;  %2616 = vmatprep.subr.bf16.mxu0 %v2615_v39 }
0x2a9b   :  { %2500 = vmatprep.mubr.msk.f32.mxu0 %vm201_vm2, %v2057_v34  ;;  %2618 = vmatpush3.bf16.msra.mxu0 %v2615_v39 }
0x2aa3   :  { %v2727_v40 = vpop.eup %2726 }
0x2aa4   :  { %2029 = vrot.lane.b32.xlu1 %v2727_v40, %s2879_s3 }
0x2b16   :  { %v2030_v43 = vpop.permute.xlu1 %2029 }
0x2b17   :  { %v2032_v45 = vmul.f32 %v2030_v43, %v2027_v41 }
0x2b19   :  { %v2036_v0 = vadd.f32 %v2035_v1, %v2032_v45 }
0x2b1b   :  { %v2042_v13 = vsel %vm1070_vm5, %v2041_v20, %v2036_v0 }
0x2b1c   :  { %2058 = vrot.lane.b32.xlu1 %v2042_v13, %s2879_s3 }
0x2b8e   :  { %v2059_v46 = vpop.permute.xlu1 %2058 }
0x2b8f   :  { %2501 = vmatmul.mubr.msk.f32.vlgmr.msra.gmra.mrb[18].mxu0 %vm201_vm2, %v2059_v46 }
0x2c62   :  { %v2502_v48 = vpop.f32.mrb[18].mxu0 }
0x2c63   :  { %v2136_v49 = vadd.f32 %v2502_v48, %v2199_v47  ;;  %v2130_v50 = vpop.f32.mrb[19].mxu0 }
0x2c64   :  { %v2131_v51 = vadd.f32 %v2199_v47, %v2130_v50 }
0x2c65   :  { %2141 = vst.msk [vmem:[#allocation11 + $0x8] sm:$0xff] %vm2139_vm6, %v2136_v49 }
0x2c66   :  { %2140 = vst.msk [vmem:[#allocation11] sm:$0xff] %vm2139_vm6, %v2131_v51 }
0x2c67   :  { %2849 = shalt.err (!%p2846_p2)
}
0x2c68   :  { %s2850_s10 = scalar_lea.hbm %s3396_s11, 256 }
0x2c69   :  { %p2851_p3 = scmp.ne.s32.totalorder %s3396_s11, %s2850_s10  ;;  %p2854_p4 = scmp.lt.u32.totalorder %s2850_s10, %s3396_s11 }
0x2c6b   :  { %p2856_p5 = pnand %p2854_p4, %p2851_p3 }
0x2c6d   :  { %2859 = shalt.err (!%p2856_p5)
}
0x2c6e   :  { %2153 = dma.vmem_to_hbm [thread:$0]  %s2148_s12, 256, %s3396_s11, [#allocation4], %s2870_s29, %s2870_s29, %s2871_s30  }
0x2c6f   :  { %2866 = dma.done.wait [#allocation4], 256  }
0x2c70   :  { %2867 = vsyncadd [#allocation4], 4294967040 }
0x2c71   :  { %2157 = vsyncpa [#allocation3], 1 }
0x2c72   :  { %2158 = vsyncpa [#allocation6], 1 }
0x2c73   :  { %2159 = vsyncpa [#allocation9], 1 }
0x2c74   :  { %2160 = vsyncpa [#allocation4], 1 }

</bundles_post_ra>
